<compile_context>
chip_gen: v7x
topology: tpu7x:2x2x1
jax: 0.10.0
libtpu: 0.0.40
codegen_flags: <defaults>
</compile_context>

<pallas_src>
import jax
import jax.numpy as jnp
from jax.experimental import pallas as pl
from jax.experimental.pallas import tpu as pltpu

COUT = 6   # imgconv out channels
CIN = 2    # imgconv in channels
K = 3      # imgconv kernel size


def fused_forward_kernel(patches_ref, wcol_ref, cb_ref, g_ref, a_ref,
                         w1i_ref, w1g_ref, b1_ref, w2_ref, b2_ref,
                         w3_ref, b3_ref, out_ref):
    # patches_ref: VMEM (N*H*W, CIN*K*K) bf16 im2col patches (padding folded in)
    # wcol_ref   : VMEM (CIN*K*K, COUT)  bf16 conv weights, im2col layout
    # cb_ref     : VMEM (1, COUT)        f32  conv bias
    # g_ref      : VMEM (N, Fg)          bf16 raw graph node features
    # a_ref      : VMEM (N, N)           bf16 normalized adjacency (self loops)
    # w1i_ref    : VMEM (COUT, Hd)  bf16 | w1g_ref: (Fg, Hd) bf16 | b1: (1, Hd) f32
    # w2_ref     : VMEM (Hd, 2Hd)   bf16 | b2: (1, 2Hd) f32
    # w3_ref     : VMEM (2Hd, 2)    bf16 fused [mu | log_var] heads | b3: (1, 2) f32
    # out_ref    : VMEM (N, 2) f32
    f32 = jnp.float32
    bf16 = jnp.bfloat16

    n = a_ref.shape[0]
    hw = patches_ref.shape[0] // n
    a = a_ref[...]                                              # (N, N) bf16

    # ---- image branch: im2col conv (MXU) -> global max pool -> bias+ReLU ----
    conv = jnp.dot(patches_ref[...], wcol_ref[...],
                   preferred_element_type=f32)                  # (N*H*W, COUT)
    m = jnp.max(conv.reshape(n, hw, COUT), axis=1)              # (N, COUT)
    # bias-add and ReLU commute with the spatial max (bias is constant over
    # spatial positions, ReLU is monotone), so apply them on (N, COUT).
    img_emb = jnp.maximum(m + cb_ref[...], 0.0)                 # (N, COUT) f32

    # ---- GCN layer 1: split-concat X@W1, propagate, bias, ReLU ----
    h = (jnp.dot(img_emb.astype(bf16), w1i_ref[...], preferred_element_type=f32)
         + jnp.dot(g_ref[...], w1g_ref[...], preferred_element_type=f32))
    h = jnp.dot(a, h.astype(bf16), preferred_element_type=f32) + b1_ref[...]
    h = jnp.maximum(h, 0.0)            # dropout == identity (eval mode)

    # ---- GCN layer 2 (reassociated: (A @ H) @ W2) ----
    t = jnp.dot(a, h.astype(bf16), preferred_element_type=f32)
    h = jnp.dot(t.astype(bf16), w2_ref[...], preferred_element_type=f32) + b2_ref[...]
    h = jnp.maximum(h, 0.0)            # dropout == identity (eval mode)

    # ---- fused heads: [mu | log_var] = A @ (H @ W3) + b3 ----
    h = jnp.dot(h.astype(bf16), w3_ref[...], preferred_element_type=f32)
    out_ref[...] = jnp.dot(a, h.astype(bf16), preferred_element_type=f32) + b3_ref[...]


def im2col_patches(imgbatch):
    # (N, CIN, H, W) -> (N*H*W, CIN*K*K), 'same' padding folded in.
    n, cin, hh, ww = imgbatch.shape
    xp = jnp.pad(imgbatch.astype(jnp.float32), ((0, 0), (0, 0), (1, 1), (1, 1)))
    cols = []
    for ci in range(cin):
        for kh in range(K):
            for kw in range(K):
                cols.append(xp[:, ci, kh:kh + hh, kw:kw + ww].reshape(n, hh * ww))
    p = jnp.stack(cols, axis=-1)                      # (N, H*W, CIN*K*K)
    return p.reshape(n * hh * ww, cin * K * K)


def build_norm_adj(edge_index, edge_weights, n):
    # PyG gcn_norm: add_remaining_self_loops (weight 1 only where missing),
    # deg[i] = incoming weight sum, A_norm[i, j] = deg[i]^-1/2 w_{j->i} deg[j]^-1/2
    src = edge_index[0]
    dst = edge_index[1]
    adj = jnp.zeros((n, n), jnp.float32).at[dst, src].add(
        edge_weights.astype(jnp.float32))
    diag = jnp.diagonal(adj)
    adj = adj + jnp.diag(jnp.where(diag == 0.0, 1.0, 0.0))
    deg = jnp.sum(adj, axis=1)
    dinv = jnp.where(deg > 0, jax.lax.rsqrt(deg), 0.0)
    return (dinv[:, None] * adj * dinv[None, :]).astype(jnp.bfloat16)


def uncertainty_model_forward(params, imgbatch, graph_feats, edge_index,
                              edge_weights):
    n = graph_feats.shape[0]
    bf16 = jnp.bfloat16

    patches = im2col_patches(imgbatch).astype(bf16)             # (N*H*W, 18)
    a_norm = build_norm_adj(edge_index, edge_weights, n)        # (N, N) bf16

    # conv weights in im2col layout: Wcol[ci*9 + kh*3 + kw, co] = w[co, ci, kh, kw]
    wcol = params["imgconv_w"].transpose(1, 2, 3, 0).reshape(CIN * K * K, COUT)
    wcol = wcol.astype(bf16)
    cb = params["imgconv_b"].astype(jnp.float32)[None, :]

    # split W1 so no in-kernel concat of [img_emb | graph_feats] is needed
    w1i = params["w1"][:COUT].astype(bf16)
    w1g = params["w1"][COUT:].astype(bf16)
    b1 = params["b1"].astype(jnp.float32)[None, :]
    w2 = params["w2"].astype(bf16)
    b2 = params["b2"].astype(jnp.float32)[None, :]
    w3 = jnp.concatenate([params["w3_1"], params["w3_2"]], axis=1).astype(bf16)
    b3 = jnp.concatenate([params["b3_1"], params["b3_2"]], axis=0)[None, :]
    b3 = b3.astype(jnp.float32)

    out = pl.pallas_call(
        fused_forward_kernel,
        out_shape=jax.ShapeDtypeStruct((n, 2), jnp.float32),
        in_specs=[pl.BlockSpec(memory_space=pltpu.MemorySpace.VMEM)] * 12,
        out_specs=pl.BlockSpec(memory_space=pltpu.MemorySpace.VMEM),
    )(patches, wcol, cb, graph_feats.astype(bf16), a_norm,
      w1i, w1g, b1, w2, b2, w3, b3)

    mu = out[:, 0:1]
    log_var = out[:, 1:2]
    return mu, log_var


def init_params(key, num_features, hidden_units):
    ks = jax.random.split(key, 10)
    s = 0.1
    return {
        "imgconv_w": s * jax.random.normal(ks[0], (COUT, CIN, K, K), jnp.float32),
        "imgconv_b": s * jax.random.normal(ks[1], (COUT,), jnp.float32),
        "w1": s * jax.random.normal(ks[2], (num_features, hidden_units), jnp.float32),
        "b1": jnp.zeros((hidden_units,), jnp.float32),
        "w2": s * jax.random.normal(ks[3], (hidden_units, 2 * hidden_units), jnp.float32),
        "b2": jnp.zeros((2 * hidden_units,), jnp.float32),
        "w3_1": s * jax.random.normal(ks[4], (2 * hidden_units, 1), jnp.float32),
        "b3_1": jnp.zeros((1,), jnp.float32),
        "w3_2": s * jax.random.normal(ks[5], (2 * hidden_units, 1), jnp.float32),
        "b3_2": jnp.zeros((1,), jnp.float32),
    }


if __name__ == "__main__":
    key = jax.random.PRNGKey(0)
    k_img, k_feat, k_w, k_par = jax.random.split(key, 4)

    N = 8            # graph nodes (== image batch)
    H = W = 16       # image spatial size
    Fg = 26          # raw graph node feature dim
    num_features = COUT + Fg   # 32, input dim of conv1 (after concat)
    hidden_units = 32

    imgbatch = jax.random.normal(k_img, (N, CIN, H, W), jnp.float32)
    graph_feats = jax.random.normal(k_feat, (N, Fg), jnp.float32)

    # simple bidirectional ring graph over N nodes
    src = jnp.arange(N, dtype=jnp.int32)
    dst = (src + 1) % N
    edge_index = jnp.stack([jnp.concatenate([src, dst]),
                            jnp.concatenate([dst, src])], axis=0)   # (2, 2N)
    edge_weights = jax.random.uniform(k_w, (2 * N,), jnp.float32,
                                      minval=0.5, maxval=1.5)

    params = init_params(k_par, num_features, hidden_units)

    mu, log_var = jax.jit(uncertainty_model_forward)(
        params, imgbatch, graph_feats, edge_index, edge_weights)
    jax.block_until_ready((mu, log_var))
    assert mu.shape == (N, 1) and log_var.shape == (N, 1)
    assert bool(jnp.all(jnp.isfinite(mu))) and bool(jnp.all(jnp.isfinite(log_var)))
    print("KERNEL_OK")
</pallas_src>

<mosaic_0001>
module attributes {stable_mosaic.version = 11 : i64} {
  func.func private @main(%arg0: i32) attributes {dimension_semantics = [#tpu.dimension_semantics<core_parallel>], iteration_bounds = array<i64: 2>, tpu.core_type = #tpu.core_type<sc_scalar_subcore>, window_params = []} {
    return
  }
}

module attributes {stable_mosaic.version = 11 : i64} {
  func.func private @main(%arg0: i32) attributes {dimension_semantics = [#tpu.dimension_semantics<core_parallel>], iteration_bounds = array<i64: 2>, tpu.core_type = #tpu.core_type<sc_scalar_subcore>, window_params = []} {
    return
  }
}

module attributes {stable_mosaic.version = 11 : i64} {
  func.func @fused_forward_kernel(%arg0: memref<2048x18xbf16, #tpu.memory_space<vmem>>, %arg1: memref<18x6xbf16, #tpu.memory_space<vmem>>, %arg2: memref<1x6xf32, #tpu.memory_space<vmem>>, %arg3: memref<8x26xbf16, #tpu.memory_space<vmem>>, %arg4: memref<8x8xbf16, #tpu.memory_space<vmem>>, %arg5: memref<6x32xbf16, #tpu.memory_space<vmem>>, %arg6: memref<26x32xbf16, #tpu.memory_space<vmem>>, %arg7: memref<1x32xf32, #tpu.memory_space<vmem>>, %arg8: memref<32x64xbf16, #tpu.memory_space<vmem>>, %arg9: memref<1x64xf32, #tpu.memory_space<vmem>>, %arg10: memref<64x2xbf16, #tpu.memory_space<vmem>>, %arg11: memref<1x2xf32, #tpu.memory_space<vmem>>, %arg12: memref<8x2xf32, #tpu.memory_space<vmem>>) attributes {dimension_semantics = [], scalar_prefetch = 0 : i64, scratch_operands = 0 : i64, tpu.core_type = #tpu.core_type<tc>} {
    %c0 = arith.constant 0 : index
    %c0_0 = arith.constant 0 : index
    %0 = vector.load %arg4[%c0, %c0_0] : memref<8x8xbf16, #tpu.memory_space<vmem>>, vector<8x8xbf16>
    %c0_1 = arith.constant 0 : index
    %c0_2 = arith.constant 0 : index
    %1 = vector.load %arg0[%c0_1, %c0_2] : memref<2048x18xbf16, #tpu.memory_space<vmem>>, vector<2048x18xbf16>
    %c0_3 = arith.constant 0 : index
    %c0_4 = arith.constant 0 : index
    %2 = vector.load %arg1[%c0_3, %c0_4] : memref<18x6xbf16, #tpu.memory_space<vmem>>, vector<18x6xbf16>
    %cst = arith.constant dense<0.000000e+00> : vector<2048x6xf32>
    %3 = tpu.matmul %1, %2, %cst {dimension_numbers = #tpu.dot_dimension_numbers<[1], [0], [0], [1], [0, 0, 1, 1], [], []>} : vector<2048x18xbf16>, vector<18x6xbf16>, vector<2048x6xf32> -> vector<2048x6xf32>
    %4 = vector.shape_cast %3 : vector<2048x6xf32> to vector<8x256x6xf32>
    %cst_5 = arith.constant dense<0xFF800000> : vector<8x6xf32>
    %5 = vector.multi_reduction <maximumf>, %4, %cst_5 [1] : vector<8x256x6xf32> to vector<8x6xf32>
    %c0_6 = arith.constant 0 : index
    %c0_7 = arith.constant 0 : index
    %6 = vector.load %arg2[%c0_6, %c0_7] : memref<1x6xf32, #tpu.memory_space<vmem>>, vector<1x6xf32>
    %7 = vector.broadcast %6 : vector<1x6xf32> to vector<8x6xf32>
    %8 = arith.addf %5, %7 : vector<8x6xf32>
    %cst_8 = arith.constant 0.000000e+00 : f32
    %9 = vector.broadcast %cst_8 : f32 to vector<8x6xf32>
    %10 = arith.maximumf %8, %9 : vector<8x6xf32>
    %11 = arith.truncf %10 : vector<8x6xf32> to vector<8x6xbf16>
    %c0_9 = arith.constant 0 : index
    %c0_10 = arith.constant 0 : index
    %12 = vector.load %arg5[%c0_9, %c0_10] : memref<6x32xbf16, #tpu.memory_space<vmem>>, vector<6x32xbf16>
    %cst_11 = arith.constant dense<0.000000e+00> : vector<8x32xf32>
    %13 = tpu.matmul %11, %12, %cst_11 {dimension_numbers = #tpu.dot_dimension_numbers<[1], [0], [0], [1], [0, 0, 1, 1], [], []>} : vector<8x6xbf16>, vector<6x32xbf16>, vector<8x32xf32> -> vector<8x32xf32>
    %c0_12 = arith.constant 0 : index
    %c0_13 = arith.constant 0 : index
    %14 = vector.load %arg3[%c0_12, %c0_13] : memref<8x26xbf16, #tpu.memory_space<vmem>>, vector<8x26xbf16>
    %c0_14 = arith.constant 0 : index
    %c0_15 = arith.constant 0 : index
    %15 = vector.load %arg6[%c0_14, %c0_15] : memref<26x32xbf16, #tpu.memory_space<vmem>>, vector<26x32xbf16>
    %cst_16 = arith.constant dense<0.000000e+00> : vector<8x32xf32>
    %16 = tpu.matmul %14, %15, %cst_16 {dimension_numbers = #tpu.dot_dimension_numbers<[1], [0], [0], [1], [0, 0, 1, 1], [], []>} : vector<8x26xbf16>, vector<26x32xbf16>, vector<8x32xf32> -> vector<8x32xf32>
    %17 = arith.addf %13, %16 : vector<8x32xf32>
    %18 = arith.truncf %17 : vector<8x32xf32> to vector<8x32xbf16>
    %cst_17 = arith.constant dense<0.000000e+00> : vector<8x32xf32>
    %19 = tpu.matmul %0, %18, %cst_17 {dimension_numbers = #tpu.dot_dimension_numbers<[1], [0], [0], [1], [0, 0, 1, 1], [], []>} : vector<8x8xbf16>, vector<8x32xbf16>, vector<8x32xf32> -> vector<8x32xf32>
    %c0_18 = arith.constant 0 : index
    %c0_19 = arith.constant 0 : index
    %20 = vector.load %arg7[%c0_18, %c0_19] : memref<1x32xf32, #tpu.memory_space<vmem>>, vector<1x32xf32>
    %21 = vector.broadcast %20 : vector<1x32xf32> to vector<8x32xf32>
    %22 = arith.addf %19, %21 : vector<8x32xf32>
    %cst_20 = arith.constant 0.000000e+00 : f32
    %23 = vector.broadcast %cst_20 : f32 to vector<8x32xf32>
    %24 = arith.maximumf %22, %23 : vector<8x32xf32>
    %25 = arith.truncf %24 : vector<8x32xf32> to vector<8x32xbf16>
    %cst_21 = arith.constant dense<0.000000e+00> : vector<8x32xf32>
    %26 = tpu.matmul %0, %25, %cst_21 {dimension_numbers = #tpu.dot_dimension_numbers<[1], [0], [0], [1], [0, 0, 1, 1], [], []>} : vector<8x8xbf16>, vector<8x32xbf16>, vector<8x32xf32> -> vector<8x32xf32>
    %27 = arith.truncf %26 : vector<8x32xf32> to vector<8x32xbf16>
    %c0_22 = arith.constant 0 : index
    %c0_23 = arith.constant 0 : index
    %28 = vector.load %arg8[%c0_22, %c0_23] : memref<32x64xbf16, #tpu.memory_space<vmem>>, vector<32x64xbf16>
    %cst_24 = arith.constant dense<0.000000e+00> : vector<8x64xf32>
    %29 = tpu.matmul %27, %28, %cst_24 {dimension_numbers = #tpu.dot_dimension_numbers<[1], [0], [0], [1], [0, 0, 1, 1], [], []>} : vector<8x32xbf16>, vector<32x64xbf16>, vector<8x64xf32> -> vector<8x64xf32>
    %c0_25 = arith.constant 0 : index
    %c0_26 = arith.constant 0 : index
    %30 = vector.load %arg9[%c0_25, %c0_26] : memref<1x64xf32, #tpu.memory_space<vmem>>, vector<1x64xf32>
    %31 = vector.broadcast %30 : vector<1x64xf32> to vector<8x64xf32>
    %32 = arith.addf %29, %31 : vector<8x64xf32>
    %cst_27 = arith.constant 0.000000e+00 : f32
    %33 = vector.broadcast %cst_27 : f32 to vector<8x64xf32>
    %34 = arith.maximumf %32, %33 : vector<8x64xf32>
    %35 = arith.truncf %34 : vector<8x64xf32> to vector<8x64xbf16>
    %c0_28 = arith.constant 0 : index
    %c0_29 = arith.constant 0 : index
    %36 = vector.load %arg10[%c0_28, %c0_29] : memref<64x2xbf16, #tpu.memory_space<vmem>>, vector<64x2xbf16>
    %cst_30 = arith.constant dense<0.000000e+00> : vector<8x2xf32>
    %37 = tpu.matmul %35, %36, %cst_30 {dimension_numbers = #tpu.dot_dimension_numbers<[1], [0], [0], [1], [0, 0, 1, 1], [], []>} : vector<8x64xbf16>, vector<64x2xbf16>, vector<8x2xf32> -> vector<8x2xf32>
    %38 = arith.truncf %37 : vector<8x2xf32> to vector<8x2xbf16>
    %cst_31 = arith.constant dense<0.000000e+00> : vector<8x2xf32>
    %39 = tpu.matmul %0, %38, %cst_31 {dimension_numbers = #tpu.dot_dimension_numbers<[1], [0], [0], [1], [0, 0, 1, 1], [], []>} : vector<8x8xbf16>, vector<8x2xbf16>, vector<8x2xf32> -> vector<8x2xf32>
    %c0_32 = arith.constant 0 : index
    %c0_33 = arith.constant 0 : index
    %40 = vector.load %arg11[%c0_32, %c0_33] : memref<1x2xf32, #tpu.memory_space<vmem>>, vector<1x2xf32>
    %41 = vector.broadcast %40 : vector<1x2xf32> to vector<8x2xf32>
    %42 = arith.addf %39, %41 : vector<8x2xf32>
    %c0_34 = arith.constant 0 : index
    %c0_35 = arith.constant 0 : index
    %43 = vector.load %arg12[%c0_34, %c0_35] : memref<8x2xf32, #tpu.memory_space<vmem>>, vector<8x2xf32>
    tpu.vector_store %arg12[%c0_34, %c0_35], %42 {strides = array<i32>} : memref<8x2xf32, #tpu.memory_space<vmem>>, vector<8x2xf32>,
    return
  }
}

</mosaic_0001>

<bundles_post_ra>
// kernel: uncertainty_model_forward.1
= control target key start
LH: loop header
LB: loop body
LE: loop exit
PB: predicated region body
PF: predicated region fallthrough
CT: control target
= control target key end

     0   :  { %vm1336_vm0 = vcmask 1040384   ;;  %vm951_vm1 = vcmask 146432   ;;  %vm2397_vm2 = vcmask 48128   ;;  %vm3002_vm3 = vcmask 1044480   ;;  %s5291_s1 = inlined_call_operand.vmem [shape: bf16[18,6], index: 1, kind: input, shape index: {}]   ;;  %s5292_s0 = inlined_call_operand.vmem [shape: bf16[2048,18], index: 0, kind: input, shape index: {}]   ;;  %s5293_s6 = inlined_call_operand.vmem [shape: bf16[26,32], index: 6, kind: input, shape index: {}]   ;;  %s5294_s2 = inlined_call_operand.vmem [shape: f32[1,6], index: 2, kind: input, shape index: {}]   ;;  %s5295_s3 = inlined_call_operand.vmem [shape: bf16[8,26], index: 3, kind: input, shape index: {}]   ;;  %s5296_s5 = inlined_call_operand.vmem [shape: bf16[6,32], index: 5, kind: input, shape index: {}]   ;;  %s5297_s4 = inlined_call_operand.vmem [shape: bf16[8,8], index: 4, kind: input, shape index: {}]   ;;  %s5298_s8 = inlined_call_operand.vmem [shape: bf16[32,64], index: 8, kind: input, shape index: {}]   ;;  %s5299_s7 = inlined_call_operand.vmem [shape: f32[1,32], index: 7, kind: input, shape index: {}]   ;;  %s5300_s10 = inlined_call_operand.vmem [shape: bf16[64,2], index: 10, kind: input, shape index: {}]   ;;  %s5301_s9 = inlined_call_operand.vmem [shape: f32[1,64], index: 9, kind: input, shape index: {}]   ;;  %s5302_s11 = inlined_call_operand.vmem [shape: f32[1,2], index: 11, kind: input, shape index: {}]   ;;  %s5303_s12 = inlined_call_operand.vmem [shape: f32[8,2], index: 12, kind: output, shape index: {}]  }
   0x1   :  { %v4185_v0 = vld [vmem:[%s5291_s1] sm:$0xff]   ;;  %v4186_v1 = vld [vmem:[%s5291_s1 + $0x8] ss:$0 sps:$4 sm:$0x11]   ;;  %v4189_v5 = vld [vmem:[%s5292_s0 + $0x10] sm:$0xff]   ;;  %vm3063_vm4 = vcmask 1041409  }
   0x2   :  { %v4187_v2 = vld [vmem:[%s5292_s0] sm:$0xff]   ;;  %3861 = vmatprep.subr.bf16.mxu0 %v4185_v0  ;;  %4173 = vmatprep.subr.bf16.mxu1 %v4185_v0  ;;  %v1338_v3 = vsel %vm1336_vm0, %v4186_v1, 0  ;;  %v4188_v4 = vld [vmem:[%s5292_s0 + $0x8] sm:$0xff]   ;;  %v4190_v6 = vld [vmem:[%s5292_s0 + $0x18] sm:$0xff]   ;;  %vm4324_vm5 = vmmov 0   ;;  %vm2998_vm6 = vcmask 211968  }
   0x3   :  { %3862 = vmatpush3.bf16.msra.mxu0 %v4185_v0  ;;  %3865 = vmatprep.mubr.msk.bf16.mxu0 %vm951_vm1, %v4187_v2  ;;  %v4191_v7 = vld [vmem:[%s5292_s0 + $0x20] sm:$0xff]   ;;  %v4192_v8 = vld [vmem:[%s5292_s0 + $0x28] sm:$0xff]   ;;  %v4193_v9 = vld [vmem:[%s5292_s0 + $0x30] sm:$0xff]   ;;  %vm3087_vm7 = vcmask 1042432   ;;  %vm3066_vm8 = vcmask 1042434   ;;  %vm3069_vm9 = vcmask 1043459  }
   0x4   :  { %4181 = vmatprep.subr.msk.bf16.mxu0 %vm1336_vm0, %v4186_v1  ;;  %4175 = vmatpush3.bf16.msra.mxu1 %v4185_v0  ;;  %v4209_v10 = vld [vmem:[%s5292_s0 + $0x240] sm:$0xff]   ;;  %v4210_v11 = vld [vmem:[%s5292_s0 + $0x248] sm:$0xff]   ;;  %v4213_v12 = vld [vmem:[%s5292_s0 + $0x250] sm:$0xff]   ;;  %vm3072_vm10 = vcmask 1044484   ;;  %vm3075_vm11 = vcmask 1045509   ;;  %vm3078_vm12 = vcmask 1046534  }
   0x5   :  { %4182 = vmatprep.subr.msk.bf16.mxu1 %vm1336_vm0, %v4186_v1  ;;  %4009 = vmatprep.mubr.msk.bf16.mxu1 %vm951_vm1, %v4209_v10  ;;  %v4194_v13 = vld [vmem:[%s5292_s0 + $0x38] sm:$0xff]   ;;  %v4195_v14 = vld [vmem:[%s5292_s0 + $0x40] sm:$0xff]   ;;  %v4196_v17 = vld [vmem:[%s5292_s0 + $0x48] sm:$0xff]   ;;  %vm3081_vm13 = vcmask 1047559   ;;  %vm3143_vm14 = vcmask 1043456   ;;  %vm3139_vm15 = vcmask 64512  }
   0x6   :  { %v4214_v15 = vld [vmem:[%s5292_s0 + $0x258] sm:$0xff]   ;;  %v4217_v16 = vld [vmem:[%s5292_s0 + $0x260] sm:$0xff]   ;;  %v4197_v18 = vld [vmem:[%s5292_s0 + $0x50] sm:$0xff]   ;;  %vm3256_vm0 = vcmask 261120  }
   0x7   :  { %3864 = vmatpush3.bf16.msra.mxu0 %v1338_v3  ;;  %v4218_v19 = vld [vmem:[%s5292_s0 + $0x268] sm:$0xff]   ;;  %v4221_v20 = vld [vmem:[%s5292_s0 + $0x270] sm:$0xff]   ;;  %v4198_v21 = vld [vmem:[%s5292_s0 + $0x58] sm:$0xff]  }
   0x8   :  { %4176 = vmatpush3.bf16.msra.mxu1 %v1338_v3  ;;  %v4199_v22 = vld [vmem:[%s5292_s0 + $0x60] sm:$0xff]   ;;  %v4222_v23 = vld [vmem:[%s5292_s0 + $0x278] sm:$0xff]   ;;  %v4200_v25 = vld [vmem:[%s5292_s0 + $0x68] sm:$0xff]  }
   0x9   :  { %v4225_v24 = vld [vmem:[%s5292_s0 + $0x280] sm:$0xff]   ;;  %v4201_v26 = vld [vmem:[%s5292_s0 + $0x70] sm:$0xff]   ;;  %v4226_v27 = vld [vmem:[%s5292_s0 + $0x288] sm:$0xff]  }
   0xa   :  { %3866 = vmatmul.mubr.msk.bf16.vlgmr.msra.gmra.mrb[0].mxu0 %vm951_vm1, %v4188_v4  ;;  %v4229_v28 = vld [vmem:[%s5292_s0 + $0x290] sm:$0xff]   ;;  %v4202_v29 = vld [vmem:[%s5292_s0 + $0x78] sm:$0xff]   ;;  %v4203_v30 = vld [vmem:[%s5292_s0 + $0x80] sm:$0xff]  }
   0xb   :  { %3869 = vmatprep.mubr.msk.bf16.mxu0 %vm951_vm1, %v4189_v5  ;;  %4010 = vmatmul.mubr.msk.bf16.vlgmr.msra.gmra.mrb[0].mxu1 %vm951_vm1, %v4210_v11  ;;  %v4230_v31 = vld [vmem:[%s5292_s0 + $0x298] sm:$0xff]   ;;  %v4233_v32 = vld [vmem:[%s5292_s0 + $0x2a0] sm:$0xff]   ;;  %v4204_v33 = vld [vmem:[%s5292_s0 + $0x88] sm:$0xff]  }
   0xc   :  { %4013 = vmatprep.mubr.msk.bf16.mxu1 %vm951_vm1, %v4213_v12  ;;  %v4205_v34 = vld [vmem:[%s5292_s0 + $0x90] sm:$0xff]   ;;  %v4234_v35 = vld [vmem:[%s5292_s0 + $0x2a8] sm:$0xff]   ;;  %v4206_v37 = vld [vmem:[%s5292_s0 + $0x98] sm:$0xff]  }
   0xd   :  { %v4237_v36 = vld [vmem:[%s5292_s0 + $0x2b0] sm:$0xff]   ;;  %v4207_v38 = vld [vmem:[%s5292_s0 + $0xa0] sm:$0xff]   ;;  %v4238_v39 = vld [vmem:[%s5292_s0 + $0x2b8] sm:$0xff]  }
   0xe   :  { %v4241_v40 = vld [vmem:[%s5292_s0 + $0x2c0] sm:$0xff]   ;;  %v4208_v41 = vld [vmem:[%s5292_s0 + $0xa8] sm:$0xff]   ;;  %v4211_v42 = vld [vmem:[%s5292_s0 + $0xb0] sm:$0xff]  }
   0xf   :  { %v4242_v43 = vld [vmem:[%s5292_s0 + $0x2c8] sm:$0xff]   ;;  %v4245_v44 = vld [vmem:[%s5292_s0 + $0x2d0] sm:$0xff]   ;;  %v4212_v45 = vld [vmem:[%s5292_s0 + $0xb8] sm:$0xff]  }
  0x10   :  { %v4215_v46 = vld [vmem:[%s5292_s0 + $0xc0] sm:$0xff]   ;;  %v4246_v47 = vld [vmem:[%s5292_s0 + $0x2d8] sm:$0xff]   ;;  %v4216_v49 = vld [vmem:[%s5292_s0 + $0xc8] sm:$0xff]  }
  0x11   :  { %v4249_v48 = vld [vmem:[%s5292_s0 + $0x2e0] sm:$0xff]   ;;  %v4219_v50 = vld [vmem:[%s5292_s0 + $0xd0] sm:$0xff]   ;;  %v4250_v51 = vld [vmem:[%s5292_s0 + $0x2e8] sm:$0xff]  }
  0x12   :  { %3870 = vmatmul.mubr.msk.bf16.gmra.mrb[4].mxu0 %vm951_vm1, %v4190_v6  ;;  %v4253_v52 = vld [vmem:[%s5292_s0 + $0x2f0] sm:$0xff]   ;;  %v4220_v53 = vld [vmem:[%s5292_s0 + $0xd8] sm:$0xff]   ;;  %v4223_v54 = vld [vmem:[%s5292_s0 + $0xe0] sm:$0xff]  }
  0x13   :  { %3873 = vmatprep.mubr.msk.bf16.mxu0 %vm951_vm1, %v4191_v7  ;;  %4014 = vmatmul.mubr.msk.bf16.gmra.mrb[4].mxu1 %vm951_vm1, %v4214_v15  ;;  %v4254_v55 = vld [vmem:[%s5292_s0 + $0x2f8] sm:$0xff]   ;;  %v4257_v56 = vld [vmem:[%s5292_s0 + $0x300] sm:$0xff]   ;;  %v4224_v57 = vld [vmem:[%s5292_s0 + $0xe8] sm:$0xff]  }
  0x14   :  { %4017 = vmatprep.mubr.msk.bf16.mxu1 %vm951_vm1, %v4217_v16  ;;  %v4227_v58 = vld [vmem:[%s5292_s0 + $0xf0] sm:$0xff]   ;;  %v4258_v59 = vld [vmem:[%s5292_s0 + $0x308] sm:$0xff]   ;;  %v4228_v61 = vld [vmem:[%s5292_s0 + $0xf8] sm:$0xff]  }
  0x15   :  { %v4261_v60 = vld [vmem:[%s5292_s0 + $0x310] sm:$0xff]   ;;  %v4231_v62 = vld [vmem:[%s5292_s0 + $0x100] sm:$0xff]   ;;  %v4262_v63 = vld [vmem:[%s5292_s0 + $0x318] sm:$0xff]  }
  0x16   :  { %v4265_v0 = vld [vmem:[%s5292_s0 + $0x320] sm:$0xff]   ;;  %v4232_v1 = vld [vmem:[%s5292_s0 + $0x108] sm:$0xff]   ;;  %v4235_v2 = vld [vmem:[%s5292_s0 + $0x110] sm:$0xff]  }
  0x17   :  { %v4266_v3 = vld [vmem:[%s5292_s0 + $0x328] sm:$0xff]   ;;  %v4269_v4 = vld [vmem:[%s5292_s0 + $0x330] sm:$0xff]   ;;  %v4236_v5 = vld [vmem:[%s5292_s0 + $0x118] sm:$0xff]  }
  0x18   :  { %v4239_v6 = vld [vmem:[%s5292_s0 + $0x120] sm:$0xff]   ;;  %v4270_v7 = vld [vmem:[%s5292_s0 + $0x338] sm:$0xff]   ;;  %v4243_v10 = vld [vmem:[%s5292_s0 + $0x130] sm:$0xff]  }
  0x19   :  { %v4274_v11 = vld [vmem:[%s5292_s0 + $0x348] sm:$0xff]   ;;  %v4277_v12 = vld [vmem:[%s5292_s0 + $0x350] sm:$0xff]   ;;  %v4278_v15 = vld [vmem:[%s5292_s0 + $0x358] sm:$0xff]  }
  0x1a   :  { %3874 = vmatmul.mubr.msk.bf16.gmra.mrb[8].mxu0 %vm951_vm1, %v4192_v8  ;;  %v4273_v8 = vld [vmem:[%s5292_s0 + $0x340] sm:$0xff]  }
  0x1b   :  { %3877 = vmatprep.mubr.msk.bf16.mxu0 %vm951_vm1, %v4193_v9  ;;  %4018 = vmatmul.mubr.msk.bf16.gmra.mrb[8].mxu1 %vm951_vm1, %v4218_v19  ;;  %v4240_v9 = vld [vmem:[%s5292_s0 + $0x128] sm:$0xff]   ;;  %v4281_v16 = vld [vmem:[%s5292_s0 + $0x360] sm:$0xff]  }
  0x1c   :  { %4021 = vmatprep.mubr.msk.bf16.mxu1 %vm951_vm1, %v4221_v20  ;;  %v4282_v19 = vld [vmem:[%s5292_s0 + $0x368] sm:$0xff]   ;;  %v4285_v20 = vld [vmem:[%s5292_s0 + $0x370] sm:$0xff]  }
  0x22   :  { %3878 = vmatmul.mubr.msk.bf16.gmra.mrb[12].mxu0 %vm951_vm1, %v4194_v13  ;;  %v4244_v13 = vld [vmem:[%s5292_s0 + $0x138] sm:$0xff]  }
  0x23   :  { %3881 = vmatprep.mubr.msk.bf16.mxu0 %vm951_vm1, %v4195_v14  ;;  %4022 = vmatmul.mubr.msk.bf16.gmra.mrb[12].mxu1 %vm951_vm1, %v4222_v23  ;;  %v4247_v14 = vld [vmem:[%s5292_s0 + $0x140] sm:$0xff]   ;;  %v4286_v23 = vld [vmem:[%s5292_s0 + $0x378] sm:$0xff]  }
  0x24   :  { %4025 = vmatprep.mubr.msk.bf16.mxu1 %vm951_vm1, %v4225_v24  ;;  %v4289_v24 = vld [vmem:[%s5292_s0 + $0x380] sm:$0xff]  }
  0x2a   :  { %3882 = vmatmul.mubr.msk.bf16.gmra.mrb[16].mxu0 %vm951_vm1, %v4196_v17  ;;  %v4248_v17 = vld [vmem:[%s5292_s0 + $0x148] sm:$0xff]  }
  0x2b   :  { %3885 = vmatprep.mubr.msk.bf16.mxu0 %vm951_vm1, %v4197_v18  ;;  %4026 = vmatmul.mubr.msk.bf16.gmra.mrb[16].mxu1 %vm951_vm1, %v4226_v27  ;;  %v4251_v18 = vld [vmem:[%s5292_s0 + $0x150] sm:$0xff]   ;;  %v4290_v27 = vld [vmem:[%s5292_s0 + $0x388] sm:$0xff]  }
  0x2c   :  { %4029 = vmatprep.mubr.msk.bf16.mxu1 %vm951_vm1, %v4229_v28  ;;  %v4293_v28 = vld [vmem:[%s5292_s0 + $0x390] sm:$0xff]  }
  0x32   :  { %3886 = vmatmul.mubr.msk.bf16.gmra.mrb[20].mxu0 %vm951_vm1, %v4198_v21  ;;  %v4252_v21 = vld [vmem:[%s5292_s0 + $0x158] sm:$0xff]  }
  0x33   :  { %3889 = vmatprep.mubr.msk.bf16.mxu0 %vm951_vm1, %v4199_v22  ;;  %4030 = vmatmul.mubr.msk.bf16.gmra.mrb[20].mxu1 %vm951_vm1, %v4230_v31  ;;  %v4255_v22 = vld [vmem:[%s5292_s0 + $0x160] sm:$0xff]   ;;  %v4294_v31 = vld [vmem:[%s5292_s0 + $0x398] sm:$0xff]  }
  0x34   :  { %4033 = vmatprep.mubr.msk.bf16.mxu1 %vm951_vm1, %v4233_v32  ;;  %v4297_v32 = vld [vmem:[%s5292_s0 + $0x3a0] sm:$0xff]  }
  0x3a   :  { %3890 = vmatmul.mubr.msk.bf16.gmra.mrb[24].mxu0 %vm951_vm1, %v4200_v25  ;;  %v4256_v25 = vld [vmem:[%s5292_s0 + $0x168] sm:$0xff]  }
  0x3b   :  { %3893 = vmatprep.mubr.msk.bf16.mxu0 %vm951_vm1, %v4201_v26  ;;  %4034 = vmatmul.mubr.msk.bf16.gmra.mrb[24].mxu1 %vm951_vm1, %v4234_v35  ;;  %v4259_v26 = vld [vmem:[%s5292_s0 + $0x170] sm:$0xff]   ;;  %v4298_v35 = vld [vmem:[%s5292_s0 + $0x3a8] sm:$0xff]  }
  0x3c   :  { %4037 = vmatprep.mubr.msk.bf16.mxu1 %vm951_vm1, %v4237_v36  ;;  %v4301_v36 = vld [vmem:[%s5292_s0 + $0x3b0] sm:$0xff]  }
  0x42   :  { %3894 = vmatmul.mubr.msk.bf16.gmra.mrb[28].mxu0 %vm951_vm1, %v4202_v29  ;;  %v4260_v29 = vld [vmem:[%s5292_s0 + $0x178] sm:$0xff]  }
  0x43   :  { %3897 = vmatprep.mubr.msk.bf16.mxu0 %vm951_vm1, %v4203_v30  ;;  %4038 = vmatmul.mubr.msk.bf16.gmra.mrb[28].mxu1 %vm951_vm1, %v4238_v39  ;;  %v4263_v30 = vld [vmem:[%s5292_s0 + $0x180] sm:$0xff]   ;;  %v4302_v39 = vld [vmem:[%s5292_s0 + $0x3b8] sm:$0xff]  }
  0x44   :  { %4041 = vmatprep.mubr.msk.bf16.mxu1 %vm951_vm1, %v4241_v40  ;;  %v4305_v40 = vld [vmem:[%s5292_s0 + $0x3c0] sm:$0xff]  }
  0x4a   :  { %3898 = vmatmul.mubr.msk.bf16.gmra.mrb[32].mxu0 %vm951_vm1, %v4204_v33  ;;  %v4264_v33 = vld [vmem:[%s5292_s0 + $0x188] sm:$0xff]  }
  0x4b   :  { %3901 = vmatprep.mubr.msk.bf16.mxu0 %vm951_vm1, %v4205_v34  ;;  %4042 = vmatmul.mubr.msk.bf16.gmra.mrb[32].mxu1 %vm951_vm1, %v4242_v43  ;;  %v4267_v34 = vld [vmem:[%s5292_s0 + $0x190] sm:$0xff]  }
  0x4c   :  { %4045 = vmatprep.mubr.msk.bf16.mxu1 %vm951_vm1, %v4245_v44  ;;  %v4275_v43 = vld [vmem:[%s5292_s0 + $0x1b0] sm:$0xff]   ;;  %v4306_v44 = vld [vmem:[%s5292_s0 + $0x3c8] sm:$0xff]  }
  0x52   :  { %3902 = vmatmul.mubr.msk.bf16.gmra.mrb[36].mxu0 %vm951_vm1, %v4206_v37  ;;  %v4268_v37 = vld [vmem:[%s5292_s0 + $0x198] sm:$0xff]  }
  0x53   :  { %3905 = vmatprep.mubr.msk.bf16.mxu0 %vm951_vm1, %v4207_v38  ;;  %4046 = vmatmul.mubr.msk.bf16.gmra.mrb[36].mxu1 %vm951_vm1, %v4246_v47  ;;  %v4271_v38 = vld [vmem:[%s5292_s0 + $0x1a0] sm:$0xff]  }
  0x54   :  { %4049 = vmatprep.mubr.msk.bf16.mxu1 %vm951_vm1, %v4249_v48 }
  0x5a   :  { %3906 = vmatmul.mubr.msk.bf16.gmra.mrb[40].mxu0 %vm951_vm1, %v4208_v41  ;;  %v4323_v41 = vmov 0.0  }
  0x5b   :  { %3909 = vmatprep.mubr.msk.bf16.mxu0 %vm951_vm1, %v4211_v42  ;;  %4050 = vmatmul.mubr.msk.bf16.gmra.mrb[40].mxu1 %vm951_vm1, %v4250_v51  ;;  %v4272_v42 = vld [vmem:[%s5292_s0 + $0x1a8] sm:$0xff]   ;;  %v4279_v51 = vld [vmem:[%s5292_s0 + $0x1c0] sm:$0xff]  }
  0x5c   :  { %4053 = vmatprep.mubr.msk.bf16.mxu1 %vm951_vm1, %v4253_v52  ;;  %4121 = vmatprep.subr.bf16.mxu1 %v4323_v41  ;;  %v4310_v52 = vld [vmem:[%s5292_s0 + $0x3d8] sm:$0xff]  }
  0x62   :  { %3910 = vmatmul.mubr.msk.bf16.gmra.mrb[44].mxu0 %vm951_vm1, %v4212_v45  ;;  %v4315_v45 = vld [vmem:[%s5293_s6] sm:$0xff]  }
  0x63   :  { %3913 = vmatprep.mubr.msk.bf16.mxu0 %vm951_vm1, %v4215_v46  ;;  %4054 = vmatmul.mubr.msk.bf16.gmra.mrb[44].mxu1 %vm951_vm1, %v4254_v55  ;;  %v4309_v46 = vld [vmem:[%s5292_s0 + $0x3d0] sm:$0xff]  }
  0x64   :  { %4057 = vmatprep.mubr.msk.bf16.mxu1 %vm951_vm1, %v4257_v56  ;;  %4122 = vmatpush3.bf16.msra.mxu1 %v4315_v45 }
  0x65   :  { %4123 = vmatprep.subr.bf16.mxu1 %v4323_v41 }
  0x6a   :  { %3914 = vmatmul.mubr.msk.bf16.gmra.mrb[48].mxu0 %vm951_vm1, %v4216_v49  ;;  %v4276_v49 = vld [vmem:[%s5292_s0 + $0x1b8] sm:$0xff]  }
  0x6b   :  { %3917 = vmatprep.mubr.msk.bf16.mxu0 %vm951_vm1, %v4219_v50  ;;  %4058 = vmatmul.mubr.msk.bf16.gmra.mrb[48].mxu1 %vm951_vm1, %v4258_v59 }
  0x6c   :  { %4061 = vmatprep.mubr.msk.bf16.mxu1 %vm951_vm1, %v4261_v60 }
  0x72   :  { %3918 = vmatmul.mubr.msk.bf16.gmra.mrb[52].mxu0 %vm951_vm1, %v4220_v53 }
  0x73   :  { %3921 = vmatprep.mubr.msk.bf16.mxu0 %vm951_vm1, %v4223_v54  ;;  %4062 = vmatmul.mubr.msk.bf16.gmra.mrb[52].mxu1 %vm951_vm1, %v4262_v63  ;;  %v4311_v54 = vld [vmem:[%s5292_s0 + $0x3e0] sm:$0xff]  }
  0x74   :  { %4065 = vmatprep.mubr.msk.bf16.mxu1 %vm951_vm1, %v4265_v0  ;;  %v4280_v0 = vld [vmem:[%s5292_s0 + $0x1c8] sm:$0xff]  }
  0x7a   :  { %3922 = vmatmul.mubr.msk.bf16.gmra.mrb[56].mxu0 %vm951_vm1, %v4224_v57 }
  0x7b   :  { %3925 = vmatprep.mubr.msk.bf16.mxu0 %vm951_vm1, %v4227_v58  ;;  %4066 = vmatmul.mubr.msk.bf16.gmra.mrb[56].mxu1 %vm951_vm1, %v4266_v3  ;;  %v4283_v3 = vld [vmem:[%s5292_s0 + $0x1d0] sm:$0xff]  }
  0x7c   :  { %4069 = vmatprep.mubr.msk.bf16.mxu1 %vm951_vm1, %v4269_v4  ;;  %v4312_v4 = vld [vmem:[%s5292_s0 + $0x3e8] sm:$0xff]  }
  0x82   :  { %3926 = vmatmul.mubr.msk.bf16.gmra.mrb[60].mxu0 %vm951_vm1, %v4228_v61 }
  0x83   :  { %3929 = vmatprep.mubr.msk.bf16.mxu0 %vm951_vm1, %v4231_v62  ;;  %4070 = vmatmul.mubr.msk.bf16.gmra.mrb[60].mxu1 %vm951_vm1, %v4270_v7  ;;  %v4313_v7 = vld [vmem:[%s5292_s0 + $0x3f0] sm:$0xff]  }
  0x84   :  { %4073 = vmatprep.mubr.msk.bf16.mxu1 %vm951_vm1, %v4273_v8 }
  0x8a   :  { %3930 = vmatmul.mubr.msk.bf16.gmra.mrb[64].mxu0 %vm951_vm1, %v4232_v1 }
  0x8b   :  { %3933 = vmatprep.mubr.msk.bf16.mxu0 %vm951_vm1, %v4235_v2  ;;  %4074 = vmatmul.mubr.msk.bf16.gmra.mrb[64].mxu1 %vm951_vm1, %v4274_v11 }
  0x8c   :  { %4077 = vmatprep.mubr.msk.bf16.mxu1 %vm951_vm1, %v4277_v12 }
  0x92   :  { %3934 = vmatmul.mubr.msk.bf16.gmra.mrb[68].mxu0 %vm951_vm1, %v4236_v5 }
  0x93   :  { %3937 = vmatprep.mubr.msk.bf16.mxu0 %vm951_vm1, %v4239_v6  ;;  %4078 = vmatmul.mubr.msk.bf16.gmra.mrb[68].mxu1 %vm951_vm1, %v4278_v15 }
  0x94   :  { %4081 = vmatprep.mubr.msk.bf16.mxu1 %vm951_vm1, %v4281_v16  ;;  %v4284_v16 = vld [vmem:[%s5292_s0 + $0x1d8] sm:$0xff]  }
  0x9a   :  { %3938 = vmatmul.mubr.msk.bf16.gmra.mrb[72].mxu0 %vm951_vm1, %v4240_v9 }
  0x9b   :  { %3941 = vmatprep.mubr.msk.bf16.mxu0 %vm951_vm1, %v4243_v10  ;;  %4082 = vmatmul.mubr.msk.bf16.gmra.mrb[72].mxu1 %vm951_vm1, %v4282_v19 }
  0x9c   :  { %4085 = vmatprep.mubr.msk.bf16.mxu1 %vm951_vm1, %v4285_v20  ;;  %v4287_v20 = vld [vmem:[%s5292_s0 + $0x1e0] sm:$0xff]  }
  0xa2   :  { %3942 = vmatmul.mubr.msk.bf16.gmra.mrb[76].mxu0 %vm951_vm1, %v4244_v13 }
  0xa3   :  { %3945 = vmatprep.mubr.msk.bf16.mxu0 %vm951_vm1, %v4247_v14  ;;  %4086 = vmatmul.mubr.msk.bf16.gmra.mrb[76].mxu1 %vm951_vm1, %v4286_v23 }
  0xa4   :  { %4089 = vmatprep.mubr.msk.bf16.mxu1 %vm951_vm1, %v4289_v24 }
  0xaa   :  { %3946 = vmatmul.mubr.msk.bf16.gmra.mrb[80].mxu0 %vm951_vm1, %v4248_v17 }
  0xab   :  { %3949 = vmatprep.mubr.msk.bf16.mxu0 %vm951_vm1, %v4251_v18  ;;  %4090 = vmatmul.mubr.msk.bf16.gmra.mrb[80].mxu1 %vm951_vm1, %v4290_v27 }
  0xac   :  { %4093 = vmatprep.mubr.msk.bf16.mxu1 %vm951_vm1, %v4293_v28 }
  0xb2   :  { %3950 = vmatmul.mubr.msk.bf16.gmra.mrb[84].mxu0 %vm951_vm1, %v4252_v21  ;;  %v4314_v21 = vld [vmem:[%s5292_s0 + $0x3f8] sm:$0xff]  }
  0xb3   :  { %3953 = vmatprep.mubr.msk.bf16.mxu0 %vm951_vm1, %v4255_v22  ;;  %4094 = vmatmul.mubr.msk.bf16.gmra.mrb[84].mxu1 %vm951_vm1, %v4294_v31 }
  0xb4   :  { %4097 = vmatprep.mubr.msk.bf16.mxu1 %vm951_vm1, %v4297_v32 }
  0xba   :  { %3954 = vmatmul.mubr.msk.bf16.gmra.mrb[88].mxu0 %vm951_vm1, %v4256_v25 }
  0xbb   :  { %3957 = vmatprep.mubr.msk.bf16.mxu0 %vm951_vm1, %v4259_v26  ;;  %4098 = vmatmul.mubr.msk.bf16.gmra.mrb[88].mxu1 %vm951_vm1, %v4298_v35 }
  0xbc   :  { %4101 = vmatprep.mubr.msk.bf16.mxu1 %vm951_vm1, %v4301_v36 }
  0xc2   :  { %3958 = vmatmul.mubr.msk.bf16.gmra.mrb[92].mxu0 %vm951_vm1, %v4260_v29 }
  0xc3   :  { %3961 = vmatprep.mubr.msk.bf16.mxu0 %vm951_vm1, %v4263_v30  ;;  %4102 = vmatmul.mubr.msk.bf16.gmra.mrb[92].mxu1 %vm951_vm1, %v4302_v39 }
  0xc4   :  { %4105 = vmatprep.mubr.msk.bf16.mxu1 %vm951_vm1, %v4305_v40 }
  0xca   :  { %3962 = vmatmul.mubr.msk.bf16.gmra.mrb[96].mxu0 %vm951_vm1, %v4264_v33 }
  0xcb   :  { %3965 = vmatprep.mubr.msk.bf16.mxu0 %vm951_vm1, %v4267_v34  ;;  %4106 = vmatmul.mubr.msk.bf16.gmra.mrb[96].mxu1 %vm951_vm1, %v4306_v44 }
  0xcc   :  { %4109 = vmatprep.mubr.msk.bf16.mxu1 %vm951_vm1, %v4309_v46 }
  0xd2   :  { %3966 = vmatmul.mubr.msk.bf16.gmra.mrb[100].mxu0 %vm951_vm1, %v4268_v37 }
  0xd3   :  { %3969 = vmatprep.mubr.msk.bf16.mxu0 %vm951_vm1, %v4271_v38  ;;  %4110 = vmatmul.mubr.msk.bf16.gmra.mrb[100].mxu1 %vm951_vm1, %v4310_v52 }
  0xd4   :  { %4113 = vmatprep.mubr.msk.bf16.mxu1 %vm951_vm1, %v4311_v54 }
  0xda   :  { %3970 = vmatmul.mubr.msk.bf16.gmra.mrb[104].mxu0 %vm951_vm1, %v4272_v42 }
  0xdb   :  { %3973 = vmatprep.mubr.msk.bf16.mxu0 %vm951_vm1, %v4275_v43  ;;  %4114 = vmatmul.mubr.msk.bf16.gmra.mrb[104].mxu1 %vm951_vm1, %v4312_v4  ;;  %v4288_v43 = vld [vmem:[%s5292_s0 + $0x1e8] sm:$0xff]   ;;  %v4292_v4 = vld [vmem:[%s5292_s0 + $0x1f8] sm:$0xff]  }
  0xdc   :  { %4117 = vmatprep.mubr.msk.bf16.mxu1 %vm951_vm1, %v4313_v7 }
  0xdd   :  { %v3867_v47 = vpop.f32.mrb[0].mxu0 }
  0xde   :  { %v1374_v48 = vpop.f32.mrb[1].mxu0  ;;  %v2401_v58 = vsel %vm2397_vm2, %v3867_v47, -inf  ;;  %v4011_v17 = vpop.f32.mrb[0].mxu1  ;;  %v4291_v47 = vld [vmem:[%s5292_s0 + $0x1f0] sm:$0xff]  }
  0xdf   :  { %v3868_v50 = vpop.f32.mrb[2].mxu0  ;;  %v2398_v55 = vsel %vm2397_vm2, %v1374_v48, -inf  ;;  %v2709_v22 = vsel %vm2397_vm2, %v4011_v17, -inf  ;;  %v1950_v23 = vpop.f32.mrb[1].mxu1 }
  0xe0   :  { %v1377_v53 = vpop.f32.mrb[3].mxu0  ;;  %v2403_v60 = vsel %vm2397_vm2, %v3868_v50, -inf  ;;  %v2705_v26 = vsel %vm2397_vm2, %v1950_v23, -inf  ;;  %v4012_v27 = vpop.f32.mrb[2].mxu1 }
  0xe1   :  { %v2399_v56 = vsel %vm2397_vm2, %v1377_v53, -inf  ;;  %v2706_v29 = vmax.f32 %v2709_v22, %v2705_v26  ;;  %v2711_v30 = vsel %vm2397_vm2, %v4012_v27, -inf  ;;  %v1953_v31 = vpop.f32.mrb[3].mxu1 }
  0xe2   :  { %v2400_v57 = vmax.f32 %v2398_v55, %v2399_v56  ;;  %3974 = vmatmul.mubr.msk.bf16.gmra.mrb[108].mxu0 %vm951_vm1, %v4276_v49  ;;  %v2707_v33 = vsel %vm2397_vm2, %v1953_v31, -inf }
  0xe3   :  { %3977 = vmatprep.mubr.msk.bf16.mxu0 %vm951_vm1, %v4279_v51  ;;  %4118 = vmatmul.mubr.msk.bf16.gmra.mrb[108].mxu1 %vm951_vm1, %v4314_v21  ;;  %v2708_v35 = vmax.f32 %v2706_v29, %v2711_v30  ;;  %v4296_v30 = vld [vmem:[%s5292_s0 + $0x208] sm:$0xff]  }
  0xe4   :  { %v2402_v59 = vmax.f32 %v2400_v57, %v2401_v58  ;;  %4125 = vmatprep.mubr.msk.bf16.mxu1 %vm4324_vm5, %v4323_v41 }
  0xe5   :  { %v3871_v61 = vpop.f32.mrb[4].mxu0  ;;  %v2710_v39 = vmax.f32 %v2708_v35, %v2707_v33  ;;  %v4299_v35 = vld [vmem:[%s5292_s0 + $0x210] sm:$0xff]  }
  0xe6   :  { %v1390_v62 = vpop.f32.mrb[5].mxu0  ;;  %v2404_v63 = vmax.f32 %v2402_v59, %v2403_v60  ;;  %v2409_v10 = vsel %vm2397_vm2, %v3871_v61, -inf  ;;  %v4015_v44 = vpop.f32.mrb[4].mxu1 }
  0xe7   :  { %v2405_v1 = vsel %vm2397_vm2, %v1390_v62, -inf  ;;  %v3872_v2 = vpop.f32.mrb[6].mxu0  ;;  %v2717_v48 = vsel %vm2397_vm2, %v4015_v44, -inf  ;;  %v1966_v49 = vpop.f32.mrb[5].mxu1 }
  0xe8   :  { %v2406_v5 = vmax.f32 %v2404_v63, %v2405_v1  ;;  %v1393_v6 = vpop.f32.mrb[7].mxu0  ;;  %v2411_v12 = vsel %vm2397_vm2, %v3872_v2, -inf  ;;  %v2712_v52 = vmax.f32 %v2710_v39, %v2717_v48  ;;  %v2713_v53 = vsel %vm2397_vm2, %v1966_v49, -inf  ;;  %v4016_v54 = vpop.f32.mrb[6].mxu1 }
  0xe9   :  { %v2407_v8 = vsel %vm2397_vm2, %v1393_v6, -inf  ;;  %v2719_v56 = vsel %vm2397_vm2, %v4016_v54, -inf  ;;  %v1969_v57 = vpop.f32.mrb[7].mxu1 }
  0xea   :  { %v2408_v9 = vmax.f32 %v2406_v5, %v2407_v8  ;;  %3978 = vmatmul.mubr.msk.bf16.gmra.mrb[112].mxu0 %vm951_vm1, %v4280_v0  ;;  %v2714_v59 = vmax.f32 %v2712_v52, %v2713_v53  ;;  %v2715_v61 = vsel %vm2397_vm2, %v1969_v57, -inf  ;;  %v4300_v57 = vld [vmem:[%s5292_s0 + $0x218] sm:$0xff]  }
  0xeb   :  { %3981 = vmatprep.mubr.msk.bf16.mxu0 %vm951_vm1, %v4283_v3 }
  0xec   :  { %v2410_v11 = vmax.f32 %v2408_v9, %v2409_v10  ;;  %v2716_v63 = vmax.f32 %v2714_v59, %v2719_v56  ;;  %v4295_v9 = vld [vmem:[%s5292_s0 + $0x200] sm:$0xff]  }
  0xed   :  { %v3875_v13 = vpop.f32.mrb[8].mxu0 }
  0xee   :  { %v1406_v14 = vpop.f32.mrb[9].mxu0  ;;  %v2412_v15 = vmax.f32 %v2410_v11, %v2411_v12  ;;  %v2417_v34 = vsel %vm2397_vm2, %v3875_v13, -inf  ;;  %v2718_v5 = vmax.f32 %v2716_v63, %v2715_v61  ;;  %v4019_v6 = vpop.f32.mrb[8].mxu1 }
  0xef   :  { %v2413_v18 = vsel %vm2397_vm2, %v1406_v14, -inf  ;;  %v3876_v19 = vpop.f32.mrb[10].mxu0  ;;  %v2725_v10 = vsel %vm2397_vm2, %v4019_v6, -inf  ;;  %v1982_v11 = vpop.f32.mrb[9].mxu1 }
  0xf0   :  { %v2414_v24 = vmax.f32 %v2412_v15, %v2413_v18  ;;  %v1409_v25 = vpop.f32.mrb[11].mxu0  ;;  %v2419_v37 = vsel %vm2397_vm2, %v3876_v19, -inf  ;;  %v2720_v14 = vmax.f32 %v2718_v5, %v2725_v10  ;;  %v2721_v15 = vsel %vm2397_vm2, %v1982_v11, -inf }
  0xf1   :  { %v2415_v28 = vsel %vm2397_vm2, %v1409_v25, -inf }
  0xf2   :  { %v2416_v32 = vmax.f32 %v2414_v24, %v2415_v28  ;;  %3982 = vmatmul.mubr.msk.bf16.gmra.mrb[116].mxu0 %vm951_vm1, %v4284_v16  ;;  %v4020_v16 = vpop.f32.mrb[10].mxu1  ;;  %v2722_v21 = vmax.f32 %v2720_v14, %v2721_v15 }
  0xf3   :  { %3985 = vmatprep.mubr.msk.bf16.mxu0 %vm951_vm1, %v4287_v20  ;;  %v2727_v18 = vsel %vm2397_vm2, %v4020_v16, -inf  ;;  %v1985_v19 = vpop.f32.mrb[11].mxu1 }
  0xf4   :  { %v2418_v36 = vmax.f32 %v2416_v32, %v2417_v34  ;;  %v2723_v23 = vsel %vm2397_vm2, %v1985_v19, -inf  ;;  %v2724_v25 = vmax.f32 %v2722_v21, %v2727_v18  ;;  %v4304_v18 = vld [vmem:[%s5292_s0 + $0x228] sm:$0xff]  }
  0xf5   :  { %v3879_v38 = vpop.f32.mrb[12].mxu0 }
  0xf6   :  { %v1422_v40 = vpop.f32.mrb[13].mxu0  ;;  %v2420_v42 = vmax.f32 %v2418_v36, %v2419_v37  ;;  %v2425_v60 = vsel %vm2397_vm2, %v3879_v38, -inf  ;;  %v2726_v31 = vmax.f32 %v2724_v25, %v2723_v23  ;;  %v4023_v32 = vpop.f32.mrb[12].mxu1 }
  0xf7   :  { %v2421_v45 = vsel %vm2397_vm2, %v1422_v40, -inf  ;;  %v3880_v46 = vpop.f32.mrb[14].mxu0  ;;  %v2733_v36 = vsel %vm2397_vm2, %v4023_v32, -inf  ;;  %v1998_v37 = vpop.f32.mrb[13].mxu1 }
  0xf8   :  { %v2422_v50 = vmax.f32 %v2420_v42, %v2421_v45  ;;  %v1425_v51 = vpop.f32.mrb[15].mxu0  ;;  %v2427_v0 = vsel %vm2397_vm2, %v3880_v46, -inf  ;;  %v2728_v40 = vmax.f32 %v2726_v31, %v2733_v36  ;;  %v2729_v42 = vsel %vm2397_vm2, %v1998_v37, -inf }
  0xf9   :  { %v2423_v55 = vsel %vm2397_vm2, %v1425_v51, -inf }
  0xfa   :  { %v2424_v58 = vmax.f32 %v2422_v50, %v2423_v55  ;;  %3986 = vmatmul.mubr.msk.bf16.gmra.mrb[120].mxu0 %vm951_vm1, %v4288_v43  ;;  %v4024_v43 = vpop.f32.mrb[14].mxu1  ;;  %v2730_v48 = vmax.f32 %v2728_v40, %v2729_v42 }
  0xfb   :  { %3989 = vmatprep.mubr.msk.bf16.mxu0 %vm951_vm1, %v4291_v47  ;;  %v2735_v45 = vsel %vm2397_vm2, %v4024_v43, -inf  ;;  %v2001_v46 = vpop.f32.mrb[15].mxu1 }
  0xfc   :  { %v2426_v62 = vmax.f32 %v2424_v58, %v2425_v60  ;;  %v4932_v50 = vsel %vm2397_vm2, %v2001_v46, -inf  ;;  %v4934_v52 = vmax.f32 %v2730_v48, %v2735_v45  ;;  %v4308_v45 = vld [vmem:[%s5292_s0 + $0x238] sm:$0xff]  }
  0xfd   :  { %v3883_v1 = vpop.f32.mrb[16].mxu0 }
  0xfe   :  { %v1438_v2 = vpop.f32.mrb[17].mxu0  ;;  %v2428_v3 = vmax.f32 %v2426_v62, %v2427_v0  ;;  %v2433_v22 = vsel %vm2397_vm2, %v3883_v1, -inf  ;;  %v2734_v58 = vmax.f32 %v4934_v52, %v4932_v50  ;;  %v4027_v59 = vpop.f32.mrb[16].mxu1  ;;  %v4303_v62 = vld [vmem:[%s5292_s0 + $0x220] sm:$0xff]  }
  0xff   :  { %v2429_v7 = vsel %vm2397_vm2, %v1438_v2, -inf  ;;  %v3884_v8 = vpop.f32.mrb[18].mxu0  ;;  %v2014_v63 = vpop.f32.mrb[17].mxu1 }
 0x100   :  { %v2430_v12 = vmax.f32 %v2428_v3, %v2429_v7  ;;  %v1441_v13 = vpop.f32.mrb[19].mxu0  ;;  %v2435_v26 = vsel %vm2397_vm2, %v3884_v8, -inf  ;;  %v2743_v2 = vsel %vm2397_vm2, %v2014_v63, -inf  ;;  %v4028_v3 = vpop.f32.mrb[18].mxu1  ;;  %v2746_v7 = vsel %vm2397_vm2, %v4027_v59, -inf }
 0x101   :  { %v2431_v17 = vsel %vm2397_vm2, %v1441_v13, -inf  ;;  %v2017_v5 = vpop.f32.mrb[19].mxu1 }
 0x102   :  { %v2432_v20 = vmax.f32 %v2430_v12, %v2431_v17  ;;  %3990 = vmatmul.mubr.msk.bf16.gmra.mrb[124].mxu0 %vm951_vm1, %v4292_v4  ;;  %v2744_v8 = vsel %vm2397_vm2, %v2017_v5, -inf  ;;  %v2748_v12 = vsel %vm2397_vm2, %v4028_v3, -inf }
 0x103   :  { %3993 = vmatprep.mubr.msk.bf16.mxu0 %vm951_vm1, %v4295_v9  ;;  %v2745_v10 = vmax.f32 %v2743_v2, %v2744_v8 }
 0x104   :  { %v2434_v24 = vmax.f32 %v2432_v20, %v2433_v22  ;;  %v4307_v22 = vld [vmem:[%s5292_s0 + $0x230] sm:$0xff]  }
 0x105   :  { %v3887_v27 = vpop.f32.mrb[20].mxu0  ;;  %v2747_v15 = vmax.f32 %v2745_v10, %v2746_v7 }
 0x106   :  { %v1454_v28 = vpop.f32.mrb[21].mxu0  ;;  %v2436_v29 = vmax.f32 %v2434_v24, %v2435_v26  ;;  %v2441_v49 = vsel %vm2397_vm2, %v3887_v27, -inf  ;;  %v4031_v19 = vpop.f32.mrb[20].mxu1 }
 0x107   :  { %v2437_v33 = vsel %vm2397_vm2, %v1454_v28, -inf  ;;  %v3888_v34 = vpop.f32.mrb[22].mxu0  ;;  %v2030_v23 = vpop.f32.mrb[21].mxu1  ;;  %v2749_v24 = vmax.f32 %v2747_v15, %v2748_v12 }
 0x108   :  { %v2438_v38 = vmax.f32 %v2436_v29, %v2437_v33  ;;  %v1457_v39 = vpop.f32.mrb[23].mxu0  ;;  %v2443_v53 = vsel %vm2397_vm2, %v3888_v34, -inf  ;;  %v2750_v27 = vsel %vm2397_vm2, %v2030_v23, -inf  ;;  %v4032_v28 = vpop.f32.mrb[22].mxu1  ;;  %v2754_v33 = vsel %vm2397_vm2, %v4031_v19, -inf }
 0x109   :  { %v2439_v44 = vsel %vm2397_vm2, %v1457_v39, -inf  ;;  %v2033_v31 = vpop.f32.mrb[23].mxu1 }
 0x10a   :  { %v2440_v47 = vmax.f32 %v2438_v38, %v2439_v44  ;;  %3994 = vmatmul.mubr.msk.bf16.gmra.mrb[128].mxu0 %vm951_vm1, %v4296_v30  ;;  %v2751_v30 = vmax.f32 %v2749_v24, %v2750_v27  ;;  %v2752_v34 = vsel %vm2397_vm2, %v2033_v31, -inf  ;;  %v2756_v38 = vsel %vm2397_vm2, %v4032_v28, -inf }
 0x10b   :  { %3997 = vmatprep.mubr.msk.bf16.mxu0 %vm951_vm1, %v4299_v35 }
 0x10c   :  { %v2442_v51 = vmax.f32 %v2440_v47, %v2441_v49  ;;  %v2753_v36 = vmax.f32 %v2751_v30, %v2752_v34 }
 0x10d   :  { %v3891_v54 = vpop.f32.mrb[24].mxu0 }
 0x10e   :  { %v1470_v55 = vpop.f32.mrb[25].mxu0  ;;  %v2444_v56 = vmax.f32 %v2442_v51, %v2443_v53  ;;  %v2449_v9 = vsel %vm2397_vm2, %v3891_v54, -inf  ;;  %v2755_v42 = vmax.f32 %v2753_v36, %v2754_v33  ;;  %v4035_v46 = vpop.f32.mrb[24].mxu1 }
 0x10f   :  { %v2445_v60 = vsel %vm2397_vm2, %v1470_v55, -inf  ;;  %v3892_v61 = vpop.f32.mrb[26].mxu0  ;;  %v2046_v48 = vpop.f32.mrb[25].mxu1 }
 0x110   :  { %v2446_v0 = vmax.f32 %v2444_v56, %v2445_v60  ;;  %v1473_v1 = vpop.f32.mrb[27].mxu0  ;;  %v2451_v13 = vsel %vm2397_vm2, %v3892_v61, -inf  ;;  %v2757_v49 = vmax.f32 %v2755_v42, %v2756_v38  ;;  %v2758_v53 = vsel %vm2397_vm2, %v2046_v48, -inf  ;;  %v4036_v54 = vpop.f32.mrb[26].mxu1 }
 0x111   :  { %v2447_v4 = vsel %vm2397_vm2, %v1473_v1, -inf  ;;  %v2049_v59 = vpop.f32.mrb[27].mxu1  ;;  %v2762_v61 = vsel %vm2397_vm2, %v4035_v46, -inf  ;;  %v2764_v2 = vsel %vm2397_vm2, %v4036_v54, -inf }
 0x112   :  { %v2448_v6 = vmax.f32 %v2446_v0, %v2447_v4  ;;  %3998 = vmatmul.mubr.msk.bf16.gmra.mrb[132].mxu0 %vm951_vm1, %v4300_v57  ;;  %v2759_v57 = vmax.f32 %v2757_v49, %v2758_v53 }
 0x113   :  { %4001 = vmatprep.mubr.msk.bf16.mxu0 %vm951_vm1, %v4303_v62  ;;  %v2760_v62 = vsel %vm2397_vm2, %v2049_v59, -inf }
 0x114   :  { %v2450_v11 = vmax.f32 %v2448_v6, %v2449_v9  ;;  %v2761_v0 = vmax.f32 %v2759_v57, %v2760_v62 }
 0x115   :  { %v3895_v14 = vpop.f32.mrb[28].mxu0 }
 0x116   :  { %v1486_v16 = vpop.f32.mrb[29].mxu0  ;;  %v2452_v17 = vmax.f32 %v2450_v11, %v2451_v13  ;;  %v2457_v35 = vsel %vm2397_vm2, %v3895_v14, -inf  ;;  %v2763_v5 = vmax.f32 %v2761_v0, %v2762_v61  ;;  %v4039_v8 = vpop.f32.mrb[28].mxu1 }
 0x117   :  { %v2453_v20 = vsel %vm2397_vm2, %v1486_v16, -inf  ;;  %v3896_v21 = vpop.f32.mrb[30].mxu0  ;;  %v2062_v11 = vpop.f32.mrb[29].mxu1 }
 0x118   :  { %v2454_v25 = vmax.f32 %v2452_v17, %v2453_v20  ;;  %v1489_v26 = vpop.f32.mrb[31].mxu0  ;;  %v2459_v39 = vsel %vm2397_vm2, %v3896_v21, -inf  ;;  %v2765_v12 = vmax.f32 %v2763_v5, %v2764_v2  ;;  %v2766_v15 = vsel %vm2397_vm2, %v2062_v11, -inf  ;;  %v4040_v16 = vpop.f32.mrb[30].mxu1 }
 0x119   :  { %v2455_v29 = vsel %vm2397_vm2, %v1489_v26, -inf  ;;  %v2065_v19 = vpop.f32.mrb[31].mxu1  ;;  %v2770_v21 = vsel %vm2397_vm2, %v4039_v8, -inf  ;;  %v2772_v26 = vsel %vm2397_vm2, %v4040_v16, -inf }
 0x11a   :  { %v2456_v32 = vmax.f32 %v2454_v25, %v2455_v29  ;;  %4002 = vmatmul.mubr.msk.bf16.gmra.mrb[136].mxu0 %vm951_vm1, %v4304_v18  ;;  %v2767_v18 = vmax.f32 %v2765_v12, %v2766_v15 }
 0x11b   :  { %4005 = vmatprep.mubr.msk.bf16.mxu0 %vm951_vm1, %v4307_v22  ;;  %v2768_v22 = vsel %vm2397_vm2, %v2065_v19, -inf }
 0x11c   :  { %v2458_v37 = vmax.f32 %v2456_v32, %v2457_v35  ;;  %v2769_v24 = vmax.f32 %v2767_v18, %v2768_v22 }
 0x11d   :  { %v3899_v40 = vpop.f32.mrb[32].mxu0 }
 0x11e   :  { %v4971_v43 = vmax.f32 %v2458_v37, %v2459_v39  ;;  %v1502_v44 = vpop.f32.mrb[33].mxu0  ;;  %v2470_v63 = vsel %vm2397_vm2, %v3899_v40, -inf  ;;  %v2771_v29 = vmax.f32 %v2769_v24, %v2770_v21  ;;  %v4043_v32 = vpop.f32.mrb[32].mxu1 }
 0x11f   :  { %v3900_v47 = vpop.f32.mrb[34].mxu0  ;;  %v2467_v55 = vsel %vm2397_vm2, %v1502_v44, -inf  ;;  %v2078_v35 = vpop.f32.mrb[33].mxu1 }
 0x120   :  { %v1505_v51 = vpop.f32.mrb[35].mxu0  ;;  %v2472_v3 = vsel %vm2397_vm2, %v3900_v47, -inf  ;;  %v2773_v36 = vmax.f32 %v2771_v29, %v2772_v26  ;;  %v2774_v39 = vsel %vm2397_vm2, %v2078_v35, -inf  ;;  %v4044_v40 = vpop.f32.mrb[34].mxu1  ;;  %v2778_v47 = vsel %vm2397_vm2, %v4043_v32, -inf }
 0x121   :  { %v2468_v56 = vsel %vm2397_vm2, %v1505_v51, -inf  ;;  %v2780_v54 = vsel %vm2397_vm2, %v4044_v40, -inf }
 0x122   :  { %v2469_v60 = vmax.f32 %v2467_v55, %v2468_v56  ;;  %4006 = vmatmul.mubr.msk.bf16.gmra.mrb[140].mxu0 %vm951_vm1, %v4308_v45  ;;  %v2775_v44 = vmax.f32 %v2773_v36, %v2774_v39  ;;  %v2081_v45 = vpop.f32.mrb[35].mxu1  ;;  %vm3334_vm1 = vcmask 523264  }
 0x123   :  { %v2776_v48 = vsel %vm2397_vm2, %v2081_v45, -inf }
 0x124   :  { %v2471_v1 = vmax.f32 %v2469_v60, %v2470_v63  ;;  %v2777_v51 = vmax.f32 %v2775_v44, %v2776_v48  ;;  %v4316_v48 = vld [vmem:[%s5293_s6 + $0x8] sm:$0x1f]  }
 0x125   :  { %v3903_v4 = vpop.f32.mrb[36].mxu0 }
 0x126   :  { %v1518_v6 = vpop.f32.mrb[37].mxu0  ;;  %v2473_v7 = vmax.f32 %v2471_v1, %v2472_v3  ;;  %v2478_v23 = vsel %vm2397_vm2, %v3903_v4, -inf  ;;  %v2779_v57 = vmax.f32 %v2777_v51, %v2778_v47  ;;  %v4047_v61 = vpop.f32.mrb[36].mxu1 }
 0x127   :  { %v2474_v9 = vsel %vm2397_vm2, %v1518_v6, -inf  ;;  %v3904_v10 = vpop.f32.mrb[38].mxu0  ;;  %v2094_v0 = vpop.f32.mrb[37].mxu1 }
 0x128   :  { %v2475_v13 = vmax.f32 %v2473_v7, %v2474_v9  ;;  %v1521_v14 = vpop.f32.mrb[39].mxu0  ;;  %v2480_v27 = vsel %vm2397_vm2, %v3904_v10, -inf  ;;  %v2781_v1 = vmax.f32 %v2779_v57, %v2780_v54  ;;  %v2782_v4 = vsel %vm2397_vm2, %v2094_v0, -inf  ;;  %v4048_v5 = vpop.f32.mrb[38].mxu1 }
 0x129   :  { %v2476_v17 = vsel %vm2397_vm2, %v1521_v14, -inf  ;;  %v2097_v8 = vpop.f32.mrb[39].mxu1  ;;  %v2786_v10 = vsel %vm2397_vm2, %v4047_v61, -inf  ;;  %v2788_v15 = vsel %vm2397_vm2, %v4048_v5, -inf }
 0x12a   :  { %v2477_v20 = vmax.f32 %v2475_v13, %v2476_v17  ;;  %v2783_v7 = vmax.f32 %v2781_v1, %v2782_v4  ;;  %v2784_v11 = vsel %vm2397_vm2, %v2097_v8, -inf }
 0x12c   :  { %v2479_v25 = vmax.f32 %v2477_v20, %v2478_v23  ;;  %v2785_v13 = vmax.f32 %v2783_v7, %v2784_v11 }
 0x12d   :  { %v3907_v28 = vpop.f32.mrb[40].mxu0 }
 0x12e   :  { %v1534_v30 = vpop.f32.mrb[41].mxu0  ;;  %v2481_v31 = vmax.f32 %v2479_v25, %v2480_v27  ;;  %v2486_v49 = vsel %vm2397_vm2, %v3907_v28, -inf  ;;  %v2787_v18 = vmax.f32 %v2785_v13, %v2786_v10  ;;  %v4051_v21 = vpop.f32.mrb[40].mxu1 }
 0x12f   :  { %v2482_v33 = vsel %vm2397_vm2, %v1534_v30, -inf  ;;  %v3908_v34 = vpop.f32.mrb[42].mxu0  ;;  %v2110_v24 = vpop.f32.mrb[41].mxu1 }
 0x130   :  { %v2483_v37 = vmax.f32 %v2481_v31, %v2482_v33  ;;  %v1537_v38 = vpop.f32.mrb[43].mxu0  ;;  %v2488_v55 = vsel %vm2397_vm2, %v3908_v34, -inf  ;;  %v2789_v25 = vmax.f32 %v2787_v18, %v2788_v15  ;;  %v2790_v28 = vsel %vm2397_vm2, %v2110_v24, -inf  ;;  %v4052_v29 = vpop.f32.mrb[42].mxu1 }
 0x131   :  { %v2484_v42 = vsel %vm2397_vm2, %v1537_v38, -inf  ;;  %v2113_v32 = vpop.f32.mrb[43].mxu1  ;;  %v2794_v34 = vsel %vm2397_vm2, %v4051_v21, -inf  ;;  %v2796_v39 = vsel %vm2397_vm2, %v4052_v29, -inf }
 0x132   :  { %v2485_v46 = vmax.f32 %v2483_v37, %v2484_v42  ;;  %v2791_v31 = vmax.f32 %v2789_v25, %v2790_v28  ;;  %v2792_v35 = vsel %vm2397_vm2, %v2113_v32, -inf }
 0x134   :  { %v2487_v53 = vmax.f32 %v2485_v46, %v2486_v49  ;;  %v2793_v37 = vmax.f32 %v2791_v31, %v2792_v35 }
 0x135   :  { %v3911_v56 = vpop.f32.mrb[44].mxu0 }
 0x136   :  { %v1550_v59 = vpop.f32.mrb[45].mxu0  ;;  %v2489_v60 = vmax.f32 %v2487_v53, %v2488_v55  ;;  %v2494_v12 = vsel %vm2397_vm2, %v3911_v56, -inf  ;;  %v2795_v44 = vmax.f32 %v2793_v37, %v2794_v34  ;;  %v4055_v47 = vpop.f32.mrb[44].mxu1 }
 0x137   :  { %v2490_v62 = vsel %vm2397_vm2, %v1550_v59, -inf  ;;  %v3912_v63 = vpop.f32.mrb[46].mxu0  ;;  %v2126_v53 = vpop.f32.mrb[45].mxu1  ;;  %v2802_v1 = vsel %vm2397_vm2, %v4055_v47, -inf }
 0x138   :  { %v2491_v2 = vmax.f32 %v2489_v60, %v2490_v62  ;;  %v1553_v3 = vpop.f32.mrb[47].mxu0  ;;  %v2496_v16 = vsel %vm2397_vm2, %v3912_v63, -inf  ;;  %v2797_v54 = vmax.f32 %v2795_v44, %v2796_v39  ;;  %v2798_v57 = vsel %vm2397_vm2, %v2126_v53, -inf  ;;  %v4056_v59 = vpop.f32.mrb[46].mxu1 }
 0x139   :  { %v2492_v6 = vsel %vm2397_vm2, %v1553_v3, -inf  ;;  %v3004_v60 = vsel %vm3002_vm3, %v4316_v48, 0  ;;  %v2129_v63 = vpop.f32.mrb[47].mxu1 }
 0x13a   :  { %v2493_v9 = vmax.f32 %v2491_v2, %v2492_v6  ;;  %v2799_v62 = vmax.f32 %v2797_v54, %v2798_v57  ;;  %4124 = vmatpush3.bf16.msra.mxu1 %v3004_v60  ;;  %v2800_v2 = vsel %vm2397_vm2, %v2129_v63, -inf  ;;  %v2804_v6 = vsel %vm2397_vm2, %v4056_v59, -inf }
 0x13b   :  { %4129 = vmatprep.subr.bf16.mxu1 %v4323_v41 }
 0x13c   :  { %v2495_v14 = vmax.f32 %v2493_v9, %v2494_v12  ;;  %v2801_v4 = vmax.f32 %v2799_v62, %v2800_v2 }
 0x13d   :  { %v3915_v17 = vpop.f32.mrb[48].mxu0 }
 0x13e   :  { %v1566_v19 = vpop.f32.mrb[49].mxu0  ;;  %v2497_v20 = vmax.f32 %v2495_v14, %v2496_v16  ;;  %v2502_v36 = vsel %vm2397_vm2, %v3915_v17, -inf  ;;  %v2803_v9 = vmax.f32 %v2801_v4, %v2802_v1  ;;  %v4059_v12 = vpop.f32.mrb[48].mxu1  ;;  %v2461_v17 = vrot.slane %v4971_v43, 4 }
 0x13f   :  { %v2498_v22 = vsel %vm2397_vm2, %v1566_v19, -inf  ;;  %v3916_v23 = vpop.f32.mrb[50].mxu0  ;;  %v2142_v16 = vpop.f32.mrb[49].mxu1  ;;  %v2815_v25 = vsel %vm2397_vm2, %v4059_v12, -inf }
 0x140   :  { %v2499_v26 = vmax.f32 %v2497_v20, %v2498_v22  ;;  %v1569_v27 = vpop.f32.mrb[51].mxu0  ;;  %v2504_v40 = vsel %vm2397_vm2, %v3916_v23, -inf  ;;  %v5030_v15 = vmax.f32 %v2803_v9, %v2804_v6  ;;  %v2812_v20 = vsel %vm2397_vm2, %v2142_v16, -inf  ;;  %v4060_v21 = vpop.f32.mrb[50].mxu1 }
 0x141   :  { %v2500_v30 = vsel %vm2397_vm2, %v1569_v27, -inf  ;;  %v2145_v23 = vpop.f32.mrb[51].mxu1  ;;  %v2462_v29 = vmax.f32 %v4971_v43, %v2461_v17  ;;  %v2817_v31 = vsel %vm2397_vm2, %v4060_v21, -inf }
 0x142   :  { %v2501_v33 = vmax.f32 %v2499_v26, %v2500_v30  ;;  %v2813_v26 = vsel %vm2397_vm2, %v2145_v23, -inf }
 0x143   :  { %v2814_v28 = vmax.f32 %v2812_v20, %v2813_v26  ;;  %v2463_v44 = vrot.slane %v2462_v29, 2 }
 0x144   :  { %v2503_v38 = vmax.f32 %v2501_v33, %v2502_v36 }
 0x145   :  { %v3919_v42 = vpop.f32.mrb[52].mxu0  ;;  %v2816_v34 = vmax.f32 %v2814_v28, %v2815_v25  ;;  %v2464_v59 = vmax.f32 %v2462_v29, %v2463_v44 }
 0x146   :  { %v1582_v45 = vpop.f32.mrb[53].mxu0  ;;  %v2505_v46 = vmax.f32 %v2503_v38, %v2504_v40  ;;  %v2510_v3 = vsel %vm2397_vm2, %v3919_v42, -inf  ;;  %v4063_v37 = vpop.f32.mrb[52].mxu1 }
 0x147   :  { %v2506_v49 = vsel %vm2397_vm2, %v1582_v45, -inf  ;;  %v3920_v51 = vpop.f32.mrb[54].mxu0  ;;  %v2158_v40 = vpop.f32.mrb[53].mxu1  ;;  %v2818_v42 = vmax.f32 %v2816_v34, %v2817_v31  ;;  %v2823_v54 = vsel %vm2397_vm2, %v4063_v37, -inf }
 0x148   :  { %v2507_v55 = vmax.f32 %v2505_v46, %v2506_v49  ;;  %v1585_v56 = vpop.f32.mrb[55].mxu0  ;;  %v2512_v7 = vsel %vm2397_vm2, %v3920_v51, -inf  ;;  %v2819_v43 = vsel %vm2397_vm2, %v2158_v40, -inf  ;;  %v4064_v47 = vpop.f32.mrb[54].mxu1 }
 0x149   :  { %v2508_v61 = vsel %vm2397_vm2, %v1585_v56, -inf  ;;  %v2820_v49 = vmax.f32 %v2818_v42, %v2819_v43  ;;  %v2161_v51 = vpop.f32.mrb[55].mxu1 }
 0x14a   :  { %v2509_v0 = vmax.f32 %v2507_v55, %v2508_v61  ;;  %v2821_v55 = vsel %vm2397_vm2, %v2161_v51, -inf  ;;  %v2825_v61 = vsel %vm2397_vm2, %v4064_v47, -inf }
 0x14b   :  { %v2822_v57 = vmax.f32 %v2820_v49, %v2821_v55 }
 0x14c   :  { %v2511_v5 = vmax.f32 %v2509_v0, %v2510_v3 }
 0x14d   :  { %v3923_v8 = vpop.f32.mrb[56].mxu0  ;;  %v2824_v0 = vmax.f32 %v2822_v57, %v2823_v54 }
 0x14e   :  { %v1598_v10 = vpop.f32.mrb[57].mxu0  ;;  %v2513_v11 = vmax.f32 %v2511_v5, %v2512_v7  ;;  %v2518_v27 = vsel %vm2397_vm2, %v3923_v8, -inf  ;;  %v4067_v3 = vpop.f32.mrb[56].mxu1  ;;  %v2465_v7 = vrot.slane %v2464_v59, 1 }
 0x14f   :  { %v2514_v13 = vsel %vm2397_vm2, %v1598_v10, -inf  ;;  %v3924_v14 = vpop.f32.mrb[58].mxu0  ;;  %v2174_v5 = vpop.f32.mrb[57].mxu1  ;;  %v2826_v6 = vmax.f32 %v2824_v0, %v2825_v61 }
 0x150   :  { %v2515_v18 = vmax.f32 %v2513_v11, %v2514_v13  ;;  %v1601_v19 = vpop.f32.mrb[59].mxu0  ;;  %v2520_v32 = vsel %vm2397_vm2, %v3924_v14, -inf  ;;  %v2827_v10 = vsel %vm2397_vm2, %v2174_v5, -inf  ;;  %v4068_v11 = vpop.f32.mrb[58].mxu1  ;;  %v2466_v23 = vmax.f32 %v2464_v59, %v2465_v7 }
 0x151   :  { %v2516_v22 = vsel %vm2397_vm2, %v1601_v19, -inf  ;;  %v2828_v14 = vmax.f32 %v2826_v6, %v2827_v10  ;;  %v2177_v16 = vpop.f32.mrb[59].mxu1  ;;  %v2831_v19 = vsel %vm2397_vm2, %v4067_v3, -inf  ;;  %v2833_v26 = vsel %vm2397_vm2, %v4068_v11, -inf }
 0x152   :  { %v2517_v24 = vmax.f32 %v2515_v18, %v2516_v22  ;;  %v2829_v20 = vsel %vm2397_vm2, %v2177_v16, -inf }
 0x153   :  { %v2830_v22 = vmax.f32 %v2828_v14, %v2829_v20 }
 0x154   :  { %v2519_v30 = vmax.f32 %v2517_v24, %v2518_v27  ;;  %v5059_v27 = vld [vmem:[%s5294_s2] ss:$0 sm:$0xff] }
 0x155   :  { %v3927_v33 = vpop.f32.mrb[60].mxu0 }
 0x156   :  { %v1614_v35 = vpop.f32.mrb[61].mxu0  ;;  %v2521_v36 = vmax.f32 %v2519_v30, %v2520_v32  ;;  %v2526_v56 = vsel %vm2397_vm2, %v3927_v33, -inf  ;;  %v2832_v30 = vmax.f32 %v2830_v22, %v2831_v19  ;;  %v4071_v34 = vpop.f32.mrb[60].mxu1 }
 0x157   :  { %v2522_v38 = vsel %vm2397_vm2, %v1614_v35, -inf  ;;  %v3928_v39 = vpop.f32.mrb[62].mxu0  ;;  %v2190_v37 = vpop.f32.mrb[61].mxu1 }
 0x158   :  { %v2523_v45 = vmax.f32 %v2521_v36, %v2522_v38  ;;  %v1617_v46 = vpop.f32.mrb[63].mxu0  ;;  %v2528_v62 = vsel %vm2397_vm2, %v3928_v39, -inf  ;;  %v2834_v38 = vmax.f32 %v2832_v30, %v2833_v26  ;;  %v2957_v39 = vadd.f32 %v5059_v27, %v2466_v23 }
 0x159   :  { %v2524_v48 = vsel %vm2397_vm2, %v1617_v46, -inf  ;;  %v4072_v46 = vpop.f32.mrb[62].mxu1 }
 0x15a   :  { %v2525_v53 = vmax.f32 %v2523_v45, %v2524_v48  ;;  %v2835_v45 = vsel %vm2397_vm2, %v2190_v37, -inf  ;;  %v2193_v48 = vpop.f32.mrb[63].mxu1  ;;  %v2965_v57 = vmax.f32 %v2957_v39, 0.0  ;;  %v2841_v61 = vsel %vm2397_vm2, %v4072_v46, -inf }
 0x15b   :  { %v2836_v47 = vmax.f32 %v2834_v38, %v2835_v45  ;;  %v2837_v54 = vsel %vm2397_vm2, %v2193_v48, -inf }
 0x15c   :  { %v2527_v60 = vmax.f32 %v2525_v53, %v2526_v56  ;;  %v2839_v53 = vsel %vm2397_vm2, %v4071_v34, -inf }
 0x15d   :  { %v3931_v63 = vpop.f32.mrb[64].mxu0  ;;  %v2838_v56 = vmax.f32 %v2836_v47, %v2837_v54 }
 0x15e   :  { %v2529_v1 = vmax.f32 %v2527_v60, %v2528_v62  ;;  %v1630_v2 = vpop.f32.mrb[65].mxu0  ;;  %v2539_v21 = vsel %vm2397_vm2, %v3931_v63, -inf }
 0x15f   :  { %v3932_v4 = vpop.f32.mrb[66].mxu0  ;;  %v2536_v12 = vsel %vm2397_vm2, %v1630_v2, -inf  ;;  %v2840_v0 = vmax.f32 %v2838_v56, %v2839_v53 }
 0x160   :  { %v2530_v8 = vrot.slane %v2529_v1, 4  ;;  %v1633_v9 = vpop.f32.mrb[67].mxu0  ;;  %v2541_v28 = vsel %vm2397_vm2, %v3932_v4, -inf  ;;  %v4075_v4 = vpop.f32.mrb[64].mxu1 }
 0x161   :  { %v2537_v13 = vsel %vm2397_vm2, %v1633_v9, -inf  ;;  %v2206_v7 = vpop.f32.mrb[65].mxu1  ;;  %v2973_v9 = vpack.c.bf16 %v2965_v57, %v2965_v57 }
 0x162   :  { %v2531_v17 = vmax.f32 %v2529_v1, %v2530_v8  ;;  %v2538_v18 = vmax.f32 %v2536_v12, %v2537_v13  ;;  %v2842_v8 = vmax.f32 %v2840_v0, %v2841_v61  ;;  %v2843_v13 = vsel %vm2397_vm2, %v2206_v7, -inf  ;;  %v4076_v14 = vpop.f32.mrb[66].mxu1 }
 0x164   :  { %v2532_v24 = vrot.slane %v2531_v17, 2  ;;  %v2540_v25 = vmax.f32 %v2538_v18, %v2539_v21  ;;  %v2209_v18 = vpop.f32.mrb[67].mxu1  ;;  %v2847_v21 = vsel %vm2397_vm2, %v4075_v4, -inf }
 0x165   :  { %v3935_v29 = vpop.f32.mrb[68].mxu0  ;;  %v2845_v22 = vsel %vm2397_vm2, %v2209_v18, -inf }
 0x166   :  { %v2533_v31 = vmax.f32 %v2531_v17, %v2532_v24  ;;  %v1646_v32 = vpop.f32.mrb[69].mxu0  ;;  %v2542_v33 = vmax.f32 %v2540_v25, %v2541_v28  ;;  %v2547_v55 = vsel %vm2397_vm2, %v3935_v29, -inf  ;;  %v2844_v17 = vmax.f32 %v2842_v8, %v2843_v13 }
 0x167   :  { %v2543_v35 = vsel %vm2397_vm2, %v1646_v32, -inf  ;;  %v3936_v36 = vpop.f32.mrb[70].mxu0  ;;  %v3054_v25 = vunpack.c.l.b16 %v2973_v9  ;;  %v2849_v29 = vsel %vm2397_vm2, %v4076_v14, -inf }
 0x168   :  { %v2534_v40 = vrot.slane %v2533_v31, 1  ;;  %v2544_v42 = vmax.f32 %v2542_v33, %v2543_v35  ;;  %v1649_v44 = vpop.f32.mrb[71].mxu0  ;;  %v2549_v62 = vsel %vm2397_vm2, %v3936_v36, -inf  ;;  %v2846_v24 = vmax.f32 %v2844_v17, %v2845_v22  ;;  %v4079_v36 = vpop.f32.mrb[68].mxu1  ;;  %v2981_v17 = vld [vmem:[%s5296_s5] sm:$0x7] }
 0x169   :  { %v2545_v43 = vsel %vm2397_vm2, %v1649_v44, -inf  ;;  %v2222_v39 = vpop.f32.mrb[69].mxu1 }
 0x16a   :  { %v2535_v49 = vmax.f32 %v2533_v31, %v2534_v40  ;;  %v2546_v51 = vmax.f32 %v2544_v42, %v2545_v43  ;;  %v2848_v32 = vmax.f32 %v2846_v24, %v2847_v21  ;;  %v2851_v45 = vsel %vm2397_vm2, %v2222_v39, -inf  ;;  %v4080_v46 = vpop.f32.mrb[70].mxu1 }
 0x16b   :  { %v2225_v48 = vpop.f32.mrb[71].mxu1  ;;  %v2857_v57 = vsel %vm2397_vm2, %v4080_v46, -inf }
 0x16c   :  { %v2958_v59 = vadd.f32 %v5059_v27, %v2535_v49  ;;  %v2548_v60 = vmax.f32 %v2546_v51, %v2547_v55  ;;  %v2850_v40 = vmax.f32 %v2848_v32, %v2849_v29  ;;  %v2855_v51 = vsel %vm2397_vm2, %v4079_v36, -inf }
 0x16d   :  { %v3939_v63 = vpop.f32.mrb[72].mxu0  ;;  %v2853_v53 = vsel %vm2397_vm2, %v2225_v48, -inf }
 0x16e   :  { %v2966_v1 = vmax.f32 %v2958_v59, 0.0  ;;  %v1662_v2 = vpop.f32.mrb[73].mxu0  ;;  %v2550_v3 = vmax.f32 %v2548_v60, %v2549_v62  ;;  %v2555_v23 = vsel %vm2397_vm2, %v3939_v63, -inf  ;;  %v2852_v47 = vmax.f32 %v2850_v40, %v2851_v45  ;;  %v4083_v0 = vpop.f32.mrb[72].mxu1 }
 0x16f   :  { %v2551_v5 = vsel %vm2397_vm2, %v1662_v2, -inf  ;;  %v3940_v6 = vpop.f32.mrb[74].mxu0  ;;  %v2863_v14 = vsel %vm2397_vm2, %v4083_v0, -inf }
 0x170   :  { %v2974_v10 = vpack.c.bf16 %v2966_v1, %v2966_v1  ;;  %v2552_v11 = vmax.f32 %v2550_v3, %v2551_v5  ;;  %v1665_v12 = vpop.f32.mrb[75].mxu0  ;;  %v2557_v30 = vsel %vm2397_vm2, %v3940_v6, -inf  ;;  %v2854_v55 = vmax.f32 %v2852_v47, %v2853_v53  ;;  %v2238_v3 = vpop.f32.mrb[73].mxu1 }
 0x171   :  { %v2553_v16 = vsel %vm2397_vm2, %v1665_v12, -inf  ;;  %v2859_v7 = vsel %vm2397_vm2, %v2238_v3, -inf  ;;  %v4084_v8 = vpop.f32.mrb[74].mxu1  ;;  %v2982_v12 = vld [vmem:[%s5295_s3] sm:$0xf] }
 0x172   :  { %v3055_v19 = vunpack.c.l.b16 %v2974_v10  ;;  %v2554_v20 = vmax.f32 %v2552_v11, %v2553_v16  ;;  %v2856_v61 = vmax.f32 %v2854_v55, %v2855_v51  ;;  %v2241_v11 = vpop.f32.mrb[75].mxu1  ;;  %4126 = vmatmul.mubr.msk.bf16.vlgmr.msra.gmra.mrb[112].mxu1 %vm2998_vm6, %v2982_v12  ;;  %v2865_v22 = vsel %vm2397_vm2, %v4084_v8, -inf }
 0x173   :  { %v2861_v16 = vsel %vm2397_vm2, %v2241_v11, -inf  ;;  %4131 = vmatprep.mubr.msk.bf16.mxu1 %vm4324_vm5, %v4323_v41 }
 0x174   :  { %v3062_v26 = vrot.slane %v3055_v19, 7  ;;  %v2556_v28 = vmax.f32 %v2554_v20, %v2555_v23  ;;  %v2858_v4 = vmax.f32 %v2856_v61, %v2857_v57  ;;  %v3089_v20 = vsel %vm3087_vm7, %v2981_v17, 0 }
 0x175   :  { %v3943_v31 = vpop.f32.mrb[76].mxu0  ;;  %4130 = vmatpush3.bf16.msra.mxu1 %v3089_v20 }
 0x176   :  { %v5080_v33 = vsel %vm3063_vm4, %v3062_v26, %v3054_v25  ;;  %v1678_v34 = vpop.f32.mrb[77].mxu0  ;;  %v2558_v35 = vmax.f32 %v2556_v28, %v2557_v30  ;;  %v2563_v54 = vsel %vm2397_vm2, %v3943_v31, -inf  ;;  %v2860_v10 = vmax.f32 %v2858_v4, %v2859_v7  ;;  %4135 = vmatprep.subr.bf16.mxu1 %v4323_v41  ;;  %v4087_v29 = vpop.f32.mrb[76].mxu1 }
 0x177   :  { %v2559_v37 = vsel %vm2397_vm2, %v1678_v34, -inf  ;;  %v3944_v38 = vpop.f32.mrb[78].mxu0  ;;  %v2254_v32 = vpop.f32.mrb[77].mxu1  ;;  %v2871_v45 = vsel %vm2397_vm2, %v4087_v29, -inf }
 0x178   :  { %v2560_v42 = vmax.f32 %v2558_v35, %v2559_v37  ;;  %v1681_v44 = vpop.f32.mrb[79].mxu0  ;;  %v2565_v59 = vsel %vm2397_vm2, %v3944_v38, -inf  ;;  %v2862_v19 = vmax.f32 %v2860_v10, %v2861_v16  ;;  %v2867_v37 = vsel %vm2397_vm2, %v2254_v32, -inf  ;;  %v4088_v38 = vpop.f32.mrb[78].mxu1 }
 0x179   :  { %v2561_v43 = vsel %vm2397_vm2, %v1681_v44, -inf }
 0x17a   :  { %v2562_v49 = vmax.f32 %v2560_v42, %v2561_v43  ;;  %v2864_v25 = vmax.f32 %v2862_v19, %v2863_v14  ;;  %v2257_v42 = vpop.f32.mrb[79].mxu1 }
 0x17b   :  { %v2869_v46 = vsel %vm2397_vm2, %v2257_v42, -inf }
 0x17c   :  { %v2564_v56 = vmax.f32 %v2562_v49, %v2563_v54  ;;  %v2866_v34 = vmax.f32 %v2864_v25, %v2865_v22  ;;  %v2873_v49 = vsel %vm2397_vm2, %v4088_v38, -inf }
 0x17d   :  { %v3947_v60 = vpop.f32.mrb[80].mxu0 }
 0x17e   :  { %v1694_v62 = vpop.f32.mrb[81].mxu0  ;;  %v2566_v63 = vmax.f32 %v2564_v56, %v2565_v59  ;;  %v2571_v18 = vsel %vm2397_vm2, %v3947_v60, -inf  ;;  %v2868_v40 = vmax.f32 %v2866_v34, %v2867_v37  ;;  %v4091_v57 = vpop.f32.mrb[80].mxu1 }
 0x17f   :  { %v2567_v1 = vsel %vm2397_vm2, %v1694_v62, -inf  ;;  %v3948_v2 = vpop.f32.mrb[82].mxu0  ;;  %v2270_v62 = vpop.f32.mrb[81].mxu1 }
 0x180   :  { %v2568_v5 = vmax.f32 %v2566_v63, %v2567_v1  ;;  %v1697_v6 = vpop.f32.mrb[83].mxu0  ;;  %v2573_v23 = vsel %vm2397_vm2, %v3948_v2, -inf  ;;  %v2870_v47 = vmax.f32 %v2868_v40, %v2869_v46  ;;  %v2881_v1 = vsel %vm2397_vm2, %v2270_v62, -inf  ;;  %v4092_v2 = vpop.f32.mrb[82].mxu1 }
 0x181   :  { %v2569_v9 = vsel %vm2397_vm2, %v1697_v6, -inf  ;;  %v2273_v4 = vpop.f32.mrb[83].mxu1  ;;  %v2884_v6 = vsel %vm2397_vm2, %v4091_v57, -inf  ;;  %v2886_v11 = vsel %vm2397_vm2, %v4092_v2, -inf }
 0x182   :  { %v2570_v13 = vmax.f32 %v2568_v5, %v2569_v9  ;;  %v2872_v54 = vmax.f32 %v2870_v47, %v2871_v45  ;;  %v2882_v7 = vsel %vm2397_vm2, %v2273_v4, -inf }
 0x183   :  { %v2883_v9 = vmax.f32 %v2881_v1, %v2882_v7 }
 0x184   :  { %v2572_v21 = vmax.f32 %v2570_v13, %v2571_v18  ;;  %v5118_v61 = vmax.f32 %v2872_v54, %v2873_v49 }
 0x185   :  { %v3951_v24 = vpop.f32.mrb[84].mxu0  ;;  %v2885_v14 = vmax.f32 %v2883_v9, %v2884_v6 }
 0x186   :  { %v1710_v26 = vpop.f32.mrb[85].mxu0  ;;  %v2574_v28 = vmax.f32 %v2572_v21, %v2573_v23  ;;  %v2579_v43 = vsel %vm2397_vm2, %v3951_v24, -inf  ;;  %v4095_v18 = vpop.f32.mrb[84].mxu1 }
 0x187   :  { %v2575_v30 = vsel %vm2397_vm2, %v1710_v26, -inf  ;;  %v3952_v31 = vpop.f32.mrb[86].mxu0  ;;  %v2286_v21 = vpop.f32.mrb[85].mxu1  ;;  %v2887_v22 = vmax.f32 %v2885_v14, %v2886_v11  ;;  %v2892_v32 = vsel %vm2397_vm2, %v4095_v18, -inf }
 0x188   :  { %v2576_v35 = vmax.f32 %v2574_v28, %v2575_v30  ;;  %v1713_v36 = vpop.f32.mrb[87].mxu0  ;;  %v2581_v51 = vsel %vm2397_vm2, %v3952_v31, -inf  ;;  %v2888_v25 = vsel %vm2397_vm2, %v2286_v21, -inf  ;;  %v4096_v26 = vpop.f32.mrb[86].mxu1 }
 0x189   :  { %v2577_v39 = vsel %vm2397_vm2, %v1713_v36, -inf  ;;  %v2889_v29 = vmax.f32 %v2887_v22, %v2888_v25  ;;  %v2289_v30 = vpop.f32.mrb[87].mxu1  ;;  %v2894_v38 = vsel %vm2397_vm2, %v4096_v26, -inf }
 0x18a   :  { %v2578_v44 = vmax.f32 %v2576_v35, %v2577_v39  ;;  %v2890_v34 = vsel %vm2397_vm2, %v2289_v30, -inf }
 0x18b   :  { %v2891_v36 = vmax.f32 %v2889_v29, %v2890_v34 }
 0x18c   :  { %v2580_v48 = vmax.f32 %v2578_v44, %v2579_v43 }
 0x18d   :  { %v3955_v53 = vpop.f32.mrb[88].mxu0  ;;  %v2893_v42 = vmax.f32 %v2891_v36, %v2892_v32 }
 0x18e   :  { %v1726_v55 = vpop.f32.mrb[89].mxu0  ;;  %v2582_v56 = vmax.f32 %v2580_v48, %v2581_v51  ;;  %v2587_v8 = vsel %vm2397_vm2, %v3955_v53, -inf  ;;  %v4099_v46 = vpop.f32.mrb[88].mxu1 }
 0x18f   :  { %v2583_v59 = vsel %vm2397_vm2, %v1726_v55, -inf  ;;  %v3956_v60 = vpop.f32.mrb[90].mxu0  ;;  %v2302_v47 = vpop.f32.mrb[89].mxu1  ;;  %v2895_v48 = vmax.f32 %v2893_v42, %v2894_v38 }
 0x190   :  { %v2584_v63 = vmax.f32 %v2582_v56, %v2583_v59  ;;  %v1729_v0 = vpop.f32.mrb[91].mxu0  ;;  %v2589_v12 = vsel %vm2397_vm2, %v3956_v60, -inf  ;;  %v2896_v53 = vsel %vm2397_vm2, %v2302_v47, -inf  ;;  %v4100_v54 = vpop.f32.mrb[90].mxu1 }
 0x191   :  { %v2585_v3 = vsel %vm2397_vm2, %v1729_v0, -inf  ;;  %v2897_v57 = vmax.f32 %v2895_v48, %v2896_v53  ;;  %v2305_v59 = vpop.f32.mrb[91].mxu1 }
 0x192   :  { %v2586_v5 = vmax.f32 %v2584_v63, %v2585_v3  ;;  %v2900_v63 = vsel %vm2397_vm2, %v4099_v46, -inf  ;;  %v2898_v0 = vsel %vm2397_vm2, %v2305_v59, -inf }
 0x193   :  { %v2899_v2 = vmax.f32 %v2897_v57, %v2898_v0 }
 0x194   :  { %v2588_v10 = vmax.f32 %v2586_v5, %v2587_v8  ;;  %v2902_v5 = vsel %vm2397_vm2, %v4100_v54, -inf }
 0x195   :  { %v3959_v13 = vpop.f32.mrb[92].mxu0  ;;  %v2901_v8 = vmax.f32 %v2899_v2, %v2900_v63 }
 0x196   :  { %v1742_v16 = vpop.f32.mrb[93].mxu0  ;;  %v2590_v17 = vmax.f32 %v2588_v10, %v2589_v12  ;;  %v2595_v35 = vsel %vm2397_vm2, %v3959_v13, -inf  ;;  %v4103_v12 = vpop.f32.mrb[92].mxu1 }
 0x197   :  { %v2591_v19 = vsel %vm2397_vm2, %v1742_v16, -inf  ;;  %v3960_v20 = vpop.f32.mrb[94].mxu0  ;;  %v2318_v16 = vpop.f32.mrb[93].mxu1  ;;  %v2908_v29 = vsel %vm2397_vm2, %v4103_v12, -inf }
 0x198   :  { %v2592_v23 = vmax.f32 %v2590_v17, %v2591_v19  ;;  %v1745_v24 = vpop.f32.mrb[95].mxu0  ;;  %v2597_v39 = vsel %vm2397_vm2, %v3960_v20, -inf  ;;  %v2903_v17 = vmax.f32 %v2901_v8, %v2902_v5  ;;  %v2904_v21 = vsel %vm2397_vm2, %v2318_v16, -inf  ;;  %v4104_v22 = vpop.f32.mrb[94].mxu1 }
 0x199   :  { %v2593_v28 = vsel %vm2397_vm2, %v1745_v24, -inf  ;;  %v2321_v25 = vpop.f32.mrb[95].mxu1  ;;  %v2910_v36 = vsel %vm2397_vm2, %v4104_v22, -inf }
 0x19a   :  { %v2594_v31 = vmax.f32 %v2592_v23, %v2593_v28  ;;  %v2905_v24 = vmax.f32 %v2903_v17, %v2904_v21  ;;  %v2906_v30 = vsel %vm2397_vm2, %v2321_v25, -inf }
 0x19c   :  { %v2596_v37 = vmax.f32 %v2594_v31, %v2595_v35  ;;  %v2907_v32 = vmax.f32 %v2905_v24, %v2906_v30 }
 0x19d   :  { %v3963_v40 = vpop.f32.mrb[96].mxu0 }
 0x19e   :  { %v2598_v44 = vmax.f32 %v2596_v37, %v2597_v39  ;;  %v1758_v45 = vpop.f32.mrb[97].mxu0  ;;  %v2608_v1 = vsel %vm2397_vm2, %v3963_v40, -inf  ;;  %v2909_v39 = vmax.f32 %v2907_v32, %v2908_v29 }
 0x19f   :  { %v3964_v43 = vpop.f32.mrb[98].mxu0  ;;  %v2605_v55 = vsel %vm2397_vm2, %v1758_v45, -inf  ;;  %v4107_v45 = vpop.f32.mrb[96].mxu1 }
 0x1a0   :  { %v2599_v49 = vrot.slane %v2598_v44, 4  ;;  %v1761_v51 = vpop.f32.mrb[99].mxu0  ;;  %v2610_v6 = vsel %vm2397_vm2, %v3964_v43, -inf  ;;  %v2334_v47 = vpop.f32.mrb[97].mxu1  ;;  %v2911_v48 = vmax.f32 %v2909_v39, %v2910_v36  ;;  %v2916_v63 = vsel %vm2397_vm2, %v4107_v45, -inf }
 0x1a1   :  { %v2606_v56 = vsel %vm2397_vm2, %v1761_v51, -inf  ;;  %v2912_v54 = vsel %vm2397_vm2, %v2334_v47, -inf }
 0x1a2   :  { %v2600_v60 = vmax.f32 %v2598_v44, %v2599_v49  ;;  %v2607_v62 = vmax.f32 %v2605_v55, %v2606_v56  ;;  %v4108_v55 = vpop.f32.mrb[98].mxu1  ;;  %v2913_v57 = vmax.f32 %v2911_v48, %v2912_v54 }
 0x1a3   :  { %v2337_v59 = vpop.f32.mrb[99].mxu1  ;;  %v2918_v5 = vsel %vm2397_vm2, %v4108_v55, -inf }
 0x1a4   :  { %v2601_v3 = vrot.slane %v2600_v60, 2  ;;  %v2609_v4 = vmax.f32 %v2607_v62, %v2608_v1  ;;  %v2914_v0 = vsel %vm2397_vm2, %v2337_v59, -inf }
 0x1a5   :  { %v3967_v7 = vpop.f32.mrb[100].mxu0  ;;  %v2915_v2 = vmax.f32 %v2913_v57, %v2914_v0 }
 0x1a6   :  { %v2602_v9 = vmax.f32 %v2600_v60, %v2601_v3  ;;  %v1774_v10 = vpop.f32.mrb[101].mxu0  ;;  %v2611_v11 = vmax.f32 %v2609_v4, %v2610_v6  ;;  %v2616_v31 = vsel %vm2397_vm2, %v3967_v7, -inf  ;;  %v4111_v12 = vpop.f32.mrb[100].mxu1 }
 0x1a7   :  { %v2612_v13 = vsel %vm2397_vm2, %v1774_v10, -inf  ;;  %v3968_v14 = vpop.f32.mrb[102].mxu0  ;;  %v2917_v8 = vmax.f32 %v2915_v2, %v2916_v63  ;;  %v2350_v16 = vpop.f32.mrb[101].mxu1 }
 0x1a8   :  { %v2603_v18 = vrot.slane %v2602_v9, 1  ;;  %v2613_v19 = vmax.f32 %v2611_v11, %v2612_v13  ;;  %v1777_v20 = vpop.f32.mrb[103].mxu0  ;;  %v2618_v37 = vsel %vm2397_vm2, %v3968_v14, -inf  ;;  %v4112_v21 = vpop.f32.mrb[102].mxu1 }
 0x1a9   :  { %v2614_v23 = vsel %vm2397_vm2, %v1777_v20, -inf  ;;  %v2919_v17 = vmax.f32 %v2917_v8, %v2918_v5  ;;  %v2920_v20 = vsel %vm2397_vm2, %v2350_v16, -inf  ;;  %v2353_v24 = vpop.f32.mrb[103].mxu1 }
 0x1aa   :  { %v2604_v26 = vmax.f32 %v2602_v9, %v2603_v18  ;;  %v2615_v28 = vmax.f32 %v2613_v19, %v2614_v23 }
 0x1ab   :  { %v2921_v23 = vmax.f32 %v2919_v17, %v2920_v20 }
 0x1ac   :  { %v2959_v34 = vadd.f32 %v5059_v27, %v2604_v26  ;;  %v2617_v35 = vmax.f32 %v2615_v28, %v2616_v31  ;;  %v2922_v26 = vsel %vm2397_vm2, %v2353_v24, -inf  ;;  %v2926_v31 = vsel %vm2397_vm2, %v4112_v21, -inf }
 0x1ad   :  { %v3971_v38 = vpop.f32.mrb[104].mxu0  ;;  %v2923_v29 = vmax.f32 %v2921_v23, %v2922_v26 }
 0x1ae   :  { %v2967_v40 = vmax.f32 %v2959_v34, 0.0  ;;  %v1790_v42 = vpop.f32.mrb[105].mxu0  ;;  %v2619_v44 = vmax.f32 %v2617_v35, %v2618_v37  ;;  %v2624_v1 = vsel %vm2397_vm2, %v3971_v38, -inf  ;;  %v4115_v38 = vpop.f32.mrb[104].mxu1 }
 0x1af   :  { %v2620_v46 = vsel %vm2397_vm2, %v1790_v42, -inf  ;;  %v3972_v43 = vpop.f32.mrb[106].mxu0  ;;  %v2366_v42 = vpop.f32.mrb[105].mxu1  ;;  %v2932_v54 = vsel %vm2397_vm2, %v4115_v38, -inf }
 0x1b0   :  { %v2975_v49 = vpack.c.bf16 %v2967_v40, %v2967_v40  ;;  %v2621_v51 = vmax.f32 %v2619_v44, %v2620_v46  ;;  %v1793_v53 = vpop.f32.mrb[107].mxu0  ;;  %v2626_v6 = vsel %vm2397_vm2, %v3972_v43, -inf  ;;  %v2928_v43 = vsel %vm2397_vm2, %v2366_v42, -inf  ;;  %v4116_v47 = vpop.f32.mrb[106].mxu1 }
 0x1b1   :  { %v2622_v56 = vsel %vm2397_vm2, %v1793_v53, -inf }
 0x1b2   :  { %v3056_v60 = vunpack.c.l.b16 %v2975_v49  ;;  %v2623_v62 = vmax.f32 %v2621_v51, %v2622_v56  ;;  %v2369_v51 = vpop.f32.mrb[107].mxu1 }
 0x1b3   :  { %v2930_v55 = vsel %vm2397_vm2, %v2369_v51, -inf }
 0x1b4   :  { %v3065_v3 = vrot.slane %v3056_v60, 6  ;;  %v2625_v4 = vmax.f32 %v2623_v62, %v2624_v1  ;;  %v2934_v60 = vsel %vm2397_vm2, %v4116_v47, -inf }
 0x1b5   :  { %v3975_v7 = vpop.f32.mrb[108].mxu0 }
 0x1b6   :  { %v5161_v9 = vsel %vm3066_vm8, %v3065_v3, %v5080_v33  ;;  %v1806_v10 = vpop.f32.mrb[109].mxu0  ;;  %v2627_v11 = vmax.f32 %v2625_v4, %v2626_v6  ;;  %v2924_v33 = vsel %vm2397_vm2, %v4111_v12, -inf  ;;  %v2632_v28 = vsel %vm2397_vm2, %v3975_v7, -inf  ;;  %v4119_v3 = vpop.f32.mrb[108].mxu1 }
 0x1b7   :  { %v2628_v13 = vsel %vm2397_vm2, %v1806_v10, -inf  ;;  %v3976_v14 = vpop.f32.mrb[110].mxu0  ;;  %v2925_v35 = vmax.f32 %v2923_v29, %v2924_v33  ;;  %v2382_v6 = vpop.f32.mrb[109].mxu1 }
 0x1b8   :  { %v2629_v18 = vmax.f32 %v2627_v11, %v2628_v13  ;;  %v1809_v19 = vpop.f32.mrb[111].mxu0  ;;  %v2634_v32 = vsel %vm2397_vm2, %v3976_v14, -inf  ;;  %v2936_v11 = vsel %vm2397_vm2, %v2382_v6, -inf  ;;  %v4120_v12 = vpop.f32.mrb[110].mxu1 }
 0x1b9   :  { %v2630_v22 = vsel %vm2397_vm2, %v1809_v19, -inf  ;;  %v2927_v44 = vmax.f32 %v2925_v35, %v2926_v31  ;;  %v2385_v16 = vpop.f32.mrb[111].mxu1  ;;  %v2942_v23 = vsel %vm2397_vm2, %v4120_v12, -inf }
 0x1ba   :  { %v2631_v25 = vmax.f32 %v2629_v18, %v2630_v22  ;;  %v2940_v18 = vsel %vm2397_vm2, %v4119_v3, -inf  ;;  %v2938_v19 = vsel %vm2397_vm2, %v2385_v16, -inf }
 0x1bb   :  { %v2929_v49 = vmax.f32 %v2927_v44, %v2928_v43 }
 0x1bc   :  { %v2633_v30 = vmax.f32 %v2631_v25, %v2632_v28 }
 0x1bd   :  { %v3979_v34 = vpop.f32.mrb[112].mxu0  ;;  %v2931_v57 = vmax.f32 %v2929_v49, %v2930_v55 }
 0x1be   :  { %v1822_v36 = vpop.f32.mrb[113].mxu0  ;;  %v2635_v37 = vmax.f32 %v2633_v30, %v2634_v32  ;;  %v2640_v56 = vsel %vm2397_vm2, %v3979_v34, -inf }
 0x1bf   :  { %v2636_v39 = vsel %vm2397_vm2, %v1822_v36, -inf  ;;  %v3980_v40 = vpop.f32.mrb[114].mxu0  ;;  %v2933_v0 = vmax.f32 %v2931_v57, %v2932_v54 }
 0x1c0   :  { %v2637_v45 = vmax.f32 %v2635_v37, %v2636_v39  ;;  %v1825_v46 = vpop.f32.mrb[115].mxu0  ;;  %v2642_v62 = vsel %vm2397_vm2, %v3980_v40, -inf }
 0x1c1   :  { %v2638_v48 = vsel %vm2397_vm2, %v1825_v46, -inf  ;;  %v2935_v7 = vmax.f32 %v2933_v0, %v2934_v60 }
 0x1c2   :  { %v2639_v53 = vmax.f32 %v2637_v45, %v2638_v48 }
 0x1c3   :  { %v2937_v14 = vmax.f32 %v2935_v7, %v2936_v11 }
 0x1c4   :  { %v2641_v59 = vmax.f32 %v2639_v53, %v2640_v56 }
 0x1c5   :  { %v3983_v63 = vpop.f32.mrb[116].mxu0  ;;  %v2939_v21 = vmax.f32 %v2937_v14, %v2938_v19 }
 0x1c6   :  { %v1838_v1 = vpop.f32.mrb[117].mxu0  ;;  %v2643_v2 = vmax.f32 %v2641_v59, %v2642_v62  ;;  %v2648_v20 = vsel %vm2397_vm2, %v3983_v63, -inf }
 0x1c7   :  { %v2644_v4 = vsel %vm2397_vm2, %v1838_v1, -inf  ;;  %v3984_v5 = vpop.f32.mrb[118].mxu0  ;;  %v2941_v33 = vmax.f32 %v2939_v21, %v2940_v18 }
 0x1c8   :  { %v2645_v8 = vmax.f32 %v2643_v2, %v2644_v4  ;;  %v1841_v10 = vpop.f32.mrb[119].mxu0  ;;  %v2650_v24 = vsel %vm2397_vm2, %v3984_v5, -inf }
 0x1c9   :  { %v2646_v13 = vsel %vm2397_vm2, %v1841_v10, -inf  ;;  %v5188_v31 = vmax.f32 %v2941_v33, %v2942_v23 }
 0x1ca   :  { %v2647_v17 = vmax.f32 %v2645_v8, %v2646_v13 }
 0x1cc   :  { %v2649_v22 = vmax.f32 %v2647_v17, %v2648_v20 }
 0x1cd   :  { %v3987_v25 = vpop.f32.mrb[120].mxu0 }
 0x1ce   :  { %v1854_v26 = vpop.f32.mrb[121].mxu0  ;;  %v2651_v28 = vmax.f32 %v2649_v22, %v2650_v24  ;;  %v2656_v37 = vsel %vm2397_vm2, %v3987_v25, -inf }
 0x1cf   :  { %v2652_v29 = vsel %vm2397_vm2, %v1854_v26, -inf  ;;  %v3988_v30 = vpop.f32.mrb[122].mxu0 }
 0x1d0   :  { %v2653_v32 = vmax.f32 %v2651_v28, %v2652_v29  ;;  %v1857_v34 = vpop.f32.mrb[123].mxu0  ;;  %v2658_v39 = vsel %vm2397_vm2, %v3988_v30, -inf  ;;  %v2806_v29 = vrot.slane %v5030_v15, 4 }
 0x1d1   :  { %v2654_v35 = vsel %vm2397_vm2, %v1857_v34, -inf  ;;  %v2875_v34 = vrot.slane %v5118_v61, 4 }
 0x1d2   :  { %v2655_v36 = vmax.f32 %v2653_v32, %v2654_v35 }
 0x1d4   :  { %v2657_v38 = vmax.f32 %v2655_v36, %v2656_v37 }
 0x1d5   :  { %v3991_v40 = vpop.f32.mrb[124].mxu0 }
 0x1d6   :  { %v1870_v42 = vpop.f32.mrb[125].mxu0  ;;  %v2659_v44 = vmax.f32 %v2657_v38, %v2658_v39  ;;  %v2664_v51 = vsel %vm2397_vm2, %v3991_v40, -inf  ;;  %v2944_v39 = vrot.slane %v5188_v31, 4 }
 0x1d7   :  { %v2660_v45 = vsel %vm2397_vm2, %v1870_v42, -inf  ;;  %v3992_v46 = vpop.f32.mrb[126].mxu0 }
 0x1d8   :  { %v2661_v43 = vmax.f32 %v2659_v44, %v2660_v45  ;;  %v1873_v47 = vpop.f32.mrb[127].mxu0  ;;  %v2666_v54 = vsel %vm2397_vm2, %v3992_v46, -inf  ;;  %v2807_v44 = vmax.f32 %v5030_v15, %v2806_v29  ;;  %v2876_v46 = vmax.f32 %v5118_v61, %v2875_v34 }
 0x1d9   :  { %v2662_v48 = vsel %vm2397_vm2, %v1873_v47, -inf }
 0x1da   :  { %v2663_v49 = vmax.f32 %v2661_v43, %v2662_v48 }
 0x1dc   :  { %v2665_v53 = vmax.f32 %v2663_v49, %v2664_v51  ;;  %v2945_v51 = vmax.f32 %v5188_v31, %v2944_v39 }
 0x1dd   :  { %v3995_v55 = vpop.f32.mrb[128].mxu0 }
 0x1de   :  { %v2667_v56 = vmax.f32 %v2665_v53, %v2666_v54  ;;  %v1886_v57 = vpop.f32.mrb[129].mxu0  ;;  %v2677_v3 = vsel %vm2397_vm2, %v3995_v55, -inf }
 0x1df   :  { %v3996_v59 = vpop.f32.mrb[130].mxu0  ;;  %v2674_v63 = vsel %vm2397_vm2, %v1886_v57, -inf }
 0x1e0   :  { %v2668_v60 = vrot.slane %v2667_v56, 4  ;;  %v1889_v62 = vpop.f32.mrb[131].mxu0  ;;  %v2679_v6 = vsel %vm2397_vm2, %v3996_v59, -inf  ;;  %v2877_v59 = vrot.slane %v2876_v46, 2 }
 0x1e1   :  { %v2675_v0 = vsel %vm2397_vm2, %v1889_v62, -inf }
 0x1e2   :  { %v2669_v1 = vmax.f32 %v2667_v56, %v2668_v60  ;;  %v2676_v2 = vmax.f32 %v2674_v63, %v2675_v0  ;;  %v2808_v56 = vrot.slane %v2807_v44, 2  ;;  %v2946_v63 = vrot.slane %v2945_v51, 2 }
 0x1e4   :  { %v2670_v4 = vrot.slane %v2669_v1, 2  ;;  %v2678_v5 = vmax.f32 %v2676_v2, %v2677_v3  ;;  %v2878_v3 = vmax.f32 %v2876_v46, %v2877_v59 }
 0x1e5   :  { %v3999_v7 = vpop.f32.mrb[132].mxu0 }
 0x1e6   :  { %v2671_v8 = vmax.f32 %v2669_v1, %v2670_v4  ;;  %v1902_v10 = vpop.f32.mrb[133].mxu0  ;;  %v2680_v11 = vmax.f32 %v2678_v5, %v2679_v6  ;;  %v2685_v21 = vsel %vm2397_vm2, %v3999_v7, -inf  ;;  %v2809_v1 = vmax.f32 %v2807_v44, %v2808_v56 }
 0x1e7   :  { %v2681_v12 = vsel %vm2397_vm2, %v1902_v10, -inf  ;;  %v4000_v13 = vpop.f32.mrb[134].mxu0  ;;  %v2947_v4 = vmax.f32 %v2945_v51, %v2946_v63  ;;  %v2879_v7 = vrot.slane %v2878_v3, 1  ;;  %v4317_v63 = vld [vmem:[%s5298_s8] sm:$0xff]  }
 0x1e8   :  { %v2672_v14 = vrot.slane %v2671_v8, 1  ;;  %v2682_v16 = vmax.f32 %v2680_v11, %v2681_v12  ;;  %v1905_v17 = vpop.f32.mrb[135].mxu0  ;;  %v2687_v24 = vsel %vm2397_vm2, %v4000_v13, -inf  ;;  %v2810_v6 = vrot.slane %v2809_v1, 1 }
 0x1e9   :  { %v2683_v18 = vsel %vm2397_vm2, %v1905_v17, -inf  ;;  %v2948_v10 = vrot.slane %v2947_v4, 1  ;;  %v2880_v13 = vmax.f32 %v2878_v3, %v2879_v7  ;;  %v4322_v7 = vld [vmem:[%s5300_s10 + $0x18] sm:$0xff]  }
 0x1ea   :  { %v2673_v19 = vmax.f32 %v2671_v8, %v2672_v14  ;;  %v2684_v20 = vmax.f32 %v2682_v16, %v2683_v18  ;;  %v2811_v12 = vmax.f32 %v2809_v1, %v2810_v6  ;;  %v4321_v6 = vld [vmem:[%s5300_s10 + $0x10] sm:$0xff]  }
 0x1eb   :  { %v2949_v16 = vmax.f32 %v2947_v4, %v2948_v10 }
 0x1ec   :  { %v2960_v22 = vadd.f32 %v5059_v27, %v2673_v19  ;;  %v2686_v23 = vmax.f32 %v2684_v20, %v2685_v21  ;;  %v2962_v18 = vadd.f32 %v5059_v27, %v2811_v12  ;;  %v2963_v19 = vadd.f32 %v5059_v27, %v2880_v13 }
 0x1ed   :  { %v4003_v25 = vpop.f32.mrb[136].mxu0  ;;  %v2964_v21 = vadd.f32 %v5059_v27, %v2949_v16 }
 0x1ee   :  { %v2968_v33 = vmax.f32 %v2960_v22, 0.0  ;;  %v1918_v26 = vpop.f32.mrb[137].mxu0  ;;  %v2688_v28 = vmax.f32 %v2686_v23, %v2687_v24  ;;  %v2693_v45 = vsel %vm2397_vm2, %v4003_v25, -inf  ;;  %v2970_v23 = vmax.f32 %v2962_v18, 0.0 }
 0x1ef   :  { %v2689_v30 = vsel %vm2397_vm2, %v1918_v26, -inf  ;;  %v4004_v32 = vpop.f32.mrb[138].mxu0  ;;  %v2971_v24 = vmax.f32 %v2963_v19, 0.0  ;;  %v2972_v50 = vmax.f32 %v2964_v21, 0.0 }
 0x1f0   :  { %v2976_v35 = vpack.c.bf16 %v2968_v33, %v2968_v33  ;;  %v2690_v36 = vmax.f32 %v2688_v28, %v2689_v30  ;;  %v1921_v37 = vpop.f32.mrb[139].mxu0  ;;  %v2695_v48 = vsel %vm2397_vm2, %v4004_v32, -inf }
 0x1f1   :  { %v2691_v38 = vsel %vm2397_vm2, %v1921_v37, -inf  ;;  %v2979_v33 = vpack.c.bf16 %v2971_v24, %v2971_v24  ;;  %v2980_v28 = vpack.c.bf16 %v2972_v50, %v2972_v50  ;;  %v3710_v24 = vld [vmem:[%s5302_s11] ss:$0 sm:$0xff] }
 0x1f2   :  { %v3057_v40 = vunpack.c.l.b16 %v2976_v35  ;;  %v2692_v42 = vmax.f32 %v2690_v36, %v2691_v38 }
 0x1f3   :  { %v3060_v32 = vunpack.c.l.b16 %v2979_v33  ;;  %v3061_v35 = vunpack.c.l.b16 %v2980_v28 }
 0x1f4   :  { %v3068_v43 = vrot.slane %v3057_v40, 5  ;;  %v2694_v47 = vmax.f32 %v2692_v42, %v2693_v45 }
 0x1f5   :  { %v4007_v49 = vpop.f32.mrb[140].mxu0  ;;  %v3077_v38 = vrot.slane %v3060_v32, 2  ;;  %v3080_v40 = vrot.slane %v3061_v35, 1 }
 0x1f6   :  { %v3070_v53 = vsel %vm3069_vm9, %v3068_v43, %v5161_v9  ;;  %v1934_v54 = vpop.f32.mrb[141].mxu0  ;;  %v2696_v55 = vmax.f32 %v2694_v47, %v2695_v48  ;;  %v2701_v2 = vsel %vm2397_vm2, %v4007_v49, -inf }
 0x1f7   :  { %v2697_v57 = vsel %vm2397_vm2, %v1934_v54, -inf  ;;  %v4008_v15 = vpop.f32.mrb[142].mxu0  ;;  %v3698_v54 = vld [vmem:[%s5299_s7] ss:$0 sm:$0xff] }
 0x1f8   :  { %v2698_v60 = vmax.f32 %v2696_v55, %v2697_v57  ;;  %v1937_v62 = vpop.f32.mrb[143].mxu0  ;;  %v2703_v9 = vsel %vm2397_vm2, %v4008_v15, -inf }
 0x1f9   :  { %v2699_v61 = vsel %vm2397_vm2, %v1937_v62, -inf }
 0x1fa   :  { %v2700_v0 = vmax.f32 %v2698_v60, %v2699_v61 }
 0x1fc   :  { %v2702_v31 = vmax.f32 %v2700_v0, %v2701_v2  ;;  %v4318_v0 = vld [vmem:[%s5298_s8 + $0x8] sm:$0xff]   ;;  %v4319_v2 = vld [vmem:[%s5300_s10] sm:$0xff]  }
 0x1fe   :  { %v2704_v5 = vmax.f32 %v2702_v31, %v2703_v9 }
 0x200   :  { %v2736_v8 = vmax.f32 %v2734_v58, %v2704_v5  ;;  %v2978_v58 = vpack.c.bf16 %v2970_v23, %v2970_v23  ;;  %v4320_v5 = vld [vmem:[%s5300_s10 + $0x8] sm:$0xff]  }
 0x202   :  { %v2737_v11 = vrot.slane %v2736_v8, 4  ;;  %v3059_v30 = vunpack.c.l.b16 %v2978_v58 }
 0x204   :  { %v2738_v14 = vmax.f32 %v2736_v8, %v2737_v11  ;;  %v3074_v37 = vrot.slane %v3059_v30, 3  ;;  %v3701_v8 = vld [vmem:[%s5301_s9] ss:$0 sm:$0xff] }
 0x206   :  { %v2739_v17 = vrot.slane %v2738_v14, 2 }
 0x208   :  { %v2740_v20 = vmax.f32 %v2738_v14, %v2739_v17 }
 0x20a   :  { %v2741_v22 = vrot.slane %v2740_v20, 1 }
 0x20c   :  { %v2742_v25 = vmax.f32 %v2740_v20, %v2741_v22 }
 0x20e   :  { %v2961_v52 = vadd.f32 %v5059_v27, %v2742_v25 }
 0x210   :  { %v2969_v26 = vmax.f32 %v2961_v52, 0.0 }
 0x212   :  { %v2977_v29 = vpack.c.bf16 %v2969_v26, %v2969_v26 }
 0x214   :  { %v3058_v34 = vunpack.c.l.b16 %v2977_v29 }
 0x216   :  { %v3071_v36 = vrot.slane %v3058_v34, 4 }
 0x218   :  { %v3073_v39 = vsel %vm3072_vm10, %v3071_v36, %v3070_v53  ;;  %v5235_v53 = vld [vmem:[%s5297_s4] sm:$0xf] }
 0x219   :  { %v3076_v42 = vsel %vm3075_vm11, %v3074_v37, %v3073_v39 }
 0x21a   :  { %v3079_v27 = vsel %vm3078_vm12, %v3077_v38, %v3076_v42 }
 0x21b   :  { %v3082_v44 = vsel %vm3081_vm13, %v3080_v40, %v3079_v27 }
 0x21c   :  { %v3083_v45 = vpack.c.b16 %v3082_v44, %v3082_v44 }
 0x21e   :  { %4132 = vmatmul.mubr.msk.bf16.vlgmr.msra.gmra.mrb[112].mxu1 %vm2397_vm2, %v3083_v45  ;;  %vm3429_vm2 = vcmask 15360  }
 0x21f   :  { %4137 = vmatprep.mubr.msk.bf16.mxu1 %vm4324_vm5, %v4323_v41 }
 0x2f1   :  { %v3125_v46 = vpop.f32.mrb[112].mxu1 }
 0x2f2   :  { %v3131_v43 = vpack.c.bf16 %v3125_v46, %v3125_v46  ;;  %v4133_v47 = vpop.f32.mrb[113].mxu1 }
 0x2f3   :  { %v3128_v48 = vpop.f32.mrb[114].mxu1 }
 0x2f4   :  { %v3145_v49 = vsel %vm3143_vm14, %v3131_v43, 0  ;;  %v4134_v51 = vpop.f32.mrb[115].mxu1 }
 0x2f5   :  { %4136 = vmatpush3.bf16.msra.mxu1 %v3145_v49 }
 0x2f6   :  { %4141 = vmatprep.subr.bf16.mxu1 %v4323_v41 }
 0x2f8   :  { %4138 = vmatmul.mubr.msk.bf16.vlgmr.msra.gmra.mrb[116].mxu1 %vm3139_vm15, %v5235_v53 }
 0x2f9   :  { %4143 = vmatprep.mubr.msk.bf16.mxu1 %vm4324_vm5, %v4323_v41 }
 0x3cb   :  { %v3181_v55 = vpop.f32.mrb[116].mxu1 }
 0x3cc   :  { %v3182_v56 = vadd.f32 %v3698_v54, %v3181_v55  ;;  %v4139_v57 = vpop.f32.mrb[117].mxu1 }
 0x3cd   :  { %v3184_v15 = vpop.f32.mrb[118].mxu1 }
 0x3ce   :  { %v3187_v59 = vmax.f32 %v3182_v56, 0.0  ;;  %v4140_v60 = vpop.f32.mrb[119].mxu1 }
 0x3d0   :  { %v3188_v62 = vpack.c.bf16 %v3187_v59, %v3187_v59 }
 0x3d2   :  { %v3190_v61 = vsel %vm3143_vm14, %v3188_v62, 0 }
 0x3d3   :  { %4142 = vmatpush3.bf16.msra.mxu1 %v3190_v61 }
 0x3d4   :  { %4147 = vmatprep.subr.bf16.mxu1 %v4323_v41 }
 0x3d6   :  { %4144 = vmatmul.mubr.msk.bf16.vlgmr.msra.gmra.mrb[120].mxu1 %vm3139_vm15, %v5235_v53 }
 0x3d7   :  { %4148 = vmatpush3.bf16.msra.mxu1 %v4317_v63  ;;  %4151 = vmatprep.mubr.msk.bf16.mxu1 %vm4324_vm5, %v4323_v41 }
 0x3d8   :  { %4149 = vmatprep.subr.bf16.mxu1 %v4323_v41 }
 0x3db   :  { %4150 = vmatpush3.bf16.msra.mxu1 %v4318_v0 }
 0x3dc   :  { %4155 = vmatprep.subr.bf16.mxu1 %v4323_v41 }
 0x4a9   :  { %v3226_v1 = vpop.f32.mrb[120].mxu1 }
 0x4aa   :  { %v3232_v3 = vpack.c.bf16 %v3226_v1, %v3226_v1  ;;  %v4145_v31 = vpop.f32.mrb[121].mxu1 }
 0x4ab   :  { %v3229_v9 = vpop.f32.mrb[122].mxu1 }
 0x4ac   :  { %v4146_v4 = vpop.f32.mrb[123].mxu1  ;;  %4152 = vmatmul.mubr.msk.bf16.vlgmr.msra.gmra.mrb[124].mxu1 %vm3256_vm0, %v3232_v3 }
 0x4ad   :  { %4156 = vmatpush3.bf16.msra.mxu1 %v4319_v2  ;;  %4163 = vmatprep.mubr.msk.bf16.mxu1 %vm4324_vm5, %v4323_v41 }
 0x4ae   :  { %4157 = vmatprep.subr.bf16.mxu1 %v4323_v41 }
 0x4b1   :  { %4158 = vmatpush3.bf16.msra.mxu1 %v4320_v5 }
 0x4b2   :  { %4159 = vmatprep.subr.bf16.mxu1 %v4323_v41 }
 0x4b5   :  { %4160 = vmatpush3.bf16.msra.mxu1 %v4321_v6 }
 0x4b6   :  { %4161 = vmatprep.subr.bf16.mxu1 %v4323_v41 }
 0x4b9   :  { %4162 = vmatpush3.bf16.msra.mxu1 %v4322_v7 }
 0x4ba   :  { %4167 = vmatprep.subr.bf16.mxu1 %v4323_v41 }
 0x57f   :  { %v3294_v10 = vpop.f32.mrb[124].mxu1 }
 0x580   :  { %v3295_v11 = vadd.f32 %v3701_v8, %v3294_v10  ;;  %v4153_v12 = vpop.f32.mrb[125].mxu1 }
 0x581   :  { %v3297_v13 = vpop.f32.mrb[126].mxu1 }
 0x582   :  { %v3300_v14 = vmax.f32 %v3295_v11, 0.0  ;;  %v4154_v16 = vpop.f32.mrb[127].mxu1 }
 0x584   :  { %v3301_v17 = vpack.c.bf16 %v3300_v14, %v3300_v14 }
 0x586   :  { %4164 = vmatmul.mubr.msk.bf16.vlgmr.msra.gmra.mrb[128].mxu1 %vm3334_vm1, %v3301_v17 }
 0x587   :  { %4169 = vmatprep.mubr.msk.bf16.mxu1 %vm4324_vm5, %v4323_v41 }
 0x659   :  { %v3372_v18 = vpop.f32.mrb[128].mxu1 }
 0x65a   :  { %v3378_v19 = vpack.c.bf16 %v3372_v18, %v3372_v18  ;;  %v4165_v20 = vpop.f32.mrb[129].mxu1 }
 0x65b   :  { %v3375_v21 = vpop.f32.mrb[130].mxu1 }
 0x65c   :  { %v3387_v22 = vsel %vm3143_vm14, %v3378_v19, 0  ;;  %v4166_v23 = vpop.f32.mrb[131].mxu1 }
 0x65d   :  { %4168 = vmatpush3.bf16.msra.mxu1 %v3387_v22 }
 0x660   :  { %4170 = vmatmul.mubr.msk.bf16.vlgmr.msra.gmra.mrb[132].mxu1 %vm3139_vm15, %v5235_v53 }
 0x733   :  { %v3423_v25 = vpop.f32.mrb[132].mxu1 }
 0x734   :  { %v3424_v50 = vadd.f32 %v3710_v24, %v3423_v25  ;;  %v4171_v52 = vpop.f32.mrb[133].mxu1 }
 0x735   :  { %v3426_v41 = vpop.f32.mrb[134].mxu1 }
 0x736   :  { %3430 = vst.msk [vmem:[%s5303_s12] sm:$0xff] %vm3429_vm2, %v3424_v50  ;;  %v4172_v58 = vpop.f32.mrb[135].mxu1 }

</bundles_post_ra>
